<compile_context>
chip_gen: v5e
topology: v5e:2x2
jax: 0.10.0
libtpu: 0.0.40
codegen_flags: <defaults>
</compile_context>

<pallas_src>
import jax
import jax.numpy as jnp
from jax.experimental import pallas as pl
from jax.experimental.pallas import tpu as pltpu


def _round_up(n, m):
    return ((n + m - 1) // m) * m


# ----------------------------------------------------------------------------
# Parameter packing / fusion (done once, outside the kernel).
# ----------------------------------------------------------------------------
def prepare_params(params, C):
    """Fuse + pad the module parameters for the kernel.

    Returns ((w_ch, wz, w_sp, vecs), dims) where
      w_ch : (Cp, N1)  value weight with the channel-query weight as column C2
      wz   : (N1, Cp)  C/2 -> C projection (zero rows for padded columns)
      w_sp : (Cp, N2)  [spatial value | spatial query] side by side
      vecs : (5, Wmax) rows = [b_ch_joint, bz, gamma, beta, b_sp_joint]
    """
    (wv_ch, bv_ch, wq_ch, bq_ch, wz_ch, bz_ch, gamma, beta,
     wv_sp, bv_sp, wq_sp, bq_sp) = params
    C2 = C // 2
    Cp = _round_up(C, 128)
    N1 = _round_up(C2 + 1, 128)      # value columns + 1 query column, padded
    C2v = _round_up(C2, 128)
    N2 = 2 * C2v                     # [sp_v block | sp_q block]
    Wmax = max(N1, Cp, N2)

    w_ch = jnp.zeros((Cp, N1), jnp.float32)
    w_ch = w_ch.at[:C, :C2].set(wv_ch)
    w_ch = w_ch.at[:C, C2].set(wq_ch[0])          # fused channel-query column
    b_ch = (jnp.zeros((Wmax,), jnp.float32)
            .at[:C2].set(bv_ch[0]).at[C2].set(bq_ch[0, 0]))

    wz = jnp.zeros((N1, Cp), jnp.float32).at[:C2, :C].set(wz_ch)
    bz = jnp.zeros((Wmax,), jnp.float32).at[:C].set(bz_ch[0])
    gm = jnp.zeros((Wmax,), jnp.float32).at[:C].set(gamma[0])
    bt = jnp.zeros((Wmax,), jnp.float32).at[:C].set(beta[0])

    w_sp = jnp.zeros((Cp, N2), jnp.float32)
    w_sp = w_sp.at[:C, :C2].set(wv_sp)
    w_sp = w_sp.at[:C, C2v:C2v + C2].set(wq_sp)   # fused spatial-query block
    b_sp = (jnp.zeros((Wmax,), jnp.float32)
            .at[:C2].set(bv_sp[0]).at[C2v:C2v + C2].set(bq_sp[0]))

    vecs = jnp.stack([b_ch, bz, gm, bt, b_sp], axis=0)   # (5, Wmax)
    dims = dict(C=C, C2=C2, Cp=Cp, N1=N1, C2v=C2v, N2=N2, Wmax=Wmax)
    return (w_ch, wz, w_sp, vecs), dims


# ----------------------------------------------------------------------------
# Kernel
# ----------------------------------------------------------------------------
def _make_kernel(Bt, C, C2, Cp, N1, C2v, N2):
    NEG = -1e30

    def kernel(x_ref, w_ch_ref, wz_ref, w_sp_ref, vec_ref, o_ref):
        # Shared weights / packed vectors, hoisted out of the per-image loop.
        w_ch = w_ch_ref[...]                      # (Cp, N1)
        wz = wz_ref[...]                          # (N1, Cp)
        w_sp = w_sp_ref[...]                      # (Cp, N2)
        b_ch = vec_ref[0:1, :N1]
        bz = vec_ref[1:2, :Cp]
        gamma = vec_ref[2:3, :Cp]
        beta = vec_ref[3:4, :Cp]
        b_sp = vec_ref[4:5, :N2]

        # Lane masks for channel padding (hoisted: built once per grid step).
        cmask = jax.lax.broadcasted_iota(jnp.int32, (1, Cp), 1) < C
        vmask = jax.lax.broadcasted_iota(jnp.int32, (1, C2v), 1) < C2
        inv_c = 1.0 / C

        # Small static unroll over the images in this tile; the scheduler can
        # interleave image b+1's matmuls with image b's reductions.
        for b in range(Bt):
            x = x_ref[b]                                              # (HW, Cp)

            # ---------------- channel-only attention branch ----------------
            # Fused value + query projection on the MXU.
            joint = jnp.dot(x, w_ch,
                            preferred_element_type=jnp.float32) + b_ch  # (HW, N1)
            q = joint[:, C2:C2 + 1]                                   # (HW, 1)
            # softmax over the spatial (HW) axis, numerically stable
            q = q - jnp.max(q, axis=0, keepdims=True)
            q = jnp.exp(q)
            q = q * pl.reciprocal(jnp.sum(q, axis=0, keepdims=True), approx=True)
            # softmax-weighted sum over HW (extra/pad columns of `joint` are
            # killed by the zero rows of wz below, so no slicing is needed).
            ch_z = jnp.sum(joint * q, axis=0, keepdims=True)          # (1, N1)
            z = jnp.dot(ch_z, wz,
                        preferred_element_type=jnp.float32) + bz      # (1, Cp)
            # LayerNorm over the C real channels (pad lanes of z are exactly 0)
            mu = jnp.sum(z, axis=1, keepdims=True) * inv_c
            zc = jnp.where(cmask, z - mu, 0.0)
            var = jnp.sum(zc * zc, axis=1, keepdims=True) * inv_c
            zn = zc * jax.lax.rsqrt(var + 1e-5) * gamma + beta
            ch_score = jax.nn.sigmoid(zn)                             # (1, Cp)
            ch_out = ch_score * x                                     # (HW, Cp)

            # ---------------- spatial-only attention branch ----------------
            # Fused value + query projection on the MXU.
            jsp = jnp.dot(ch_out, w_sp,
                          preferred_element_type=jnp.float32) + b_sp  # (HW, N2)
            sp_v = jsp[:, :C2v]                                       # (HW, C2v)
            sq = jnp.mean(jsp[:, C2v:], axis=0, keepdims=True)        # (1, C2v)
            # softmax over channels, masking the padded lanes
            sq = jnp.where(vmask, sq, NEG)
            sq = sq - jnp.max(sq, axis=1, keepdims=True)
            sq = jnp.exp(sq)
            sq = sq * pl.reciprocal(jnp.sum(sq, axis=1, keepdims=True), approx=True)
            # sp_z = sp_v @ sq^T  — lane contraction on the MXU (trans_b dot)
            sp_z = jax.lax.dot_general(
                sp_v, sq, (((1,), (1,)), ((), ())),
                preferred_element_type=jnp.float32)                   # (HW, 1)
            o_ref[b] = jax.nn.sigmoid(sp_z) * ch_out                  # (HW, Cp)

    return kernel


# ----------------------------------------------------------------------------
# Wrappers
# ----------------------------------------------------------------------------
def _pick_bt(B, HW, Cp, N1, N2, target_rows=512,
             budget_bytes=6 * 2**20, max_bt=16):
    """Images per grid step: amortize per-step overhead, stay within VMEM."""
    per_batch_bytes = 4 * HW * (3 * Cp + N1 + N2)   # x, ch_out, out, joint, jsp
    bt = 1
    for cand in range(2, min(B, max_bt) + 1):
        if B % cand:
            continue
        if cand * per_batch_bytes > budget_bytes:
            break
        bt = cand
        if cand * HW >= target_rows:
            break
    return bt


def psa_forward_nhwc(x_nhwc, packed, dims):
    """PSA on channels-last input (B, H, W, C). Preferred entry point."""
    w_ch, wz, w_sp, vecs = packed
    C, C2, Cp, N1, C2v, N2, Wmax = (dims[k] for k in
                                    ("C", "C2", "Cp", "N1", "C2v", "N2", "Wmax"))
    B, H, W, Cin = x_nhwc.shape
    assert Cin == C
    HW = H * W

    x = x_nhwc.reshape(B, HW, C)
    if Cp != C:
        x = jnp.pad(x, ((0, 0), (0, 0), (0, Cp - C)))   # lane-dense padding

    Bt = _pick_bt(B, HW, Cp, N1, N2)
    kernel = _make_kernel(Bt, C, C2, Cp, N1, C2v, N2)

    # Explicit VMEM budget: 2x(in block) + 2x(out block) + weights + live temps.
    blk = Bt * HW * Cp
    wbytes = Cp * N1 + N1 * Cp + Cp * N2 + 5 * Wmax
    tmps = Bt * HW * (N1 + N2 + Cp)
    est = 4 * (4 * blk + 2 * wbytes + 2 * tmps)
    vmem_limit = int(min(64 * 2**20, max(16 * 2**20, est)))

    out = pl.pallas_call(
        kernel,
        out_shape=jax.ShapeDtypeStruct((B, HW, Cp), jnp.float32),
        grid=(B // Bt,),
        in_specs=[
            pl.BlockSpec((Bt, HW, Cp), lambda i: (i, 0, 0)),
            pl.BlockSpec((Cp, N1), lambda i: (0, 0)),
            pl.BlockSpec((N1, Cp), lambda i: (0, 0)),
            pl.BlockSpec((Cp, N2), lambda i: (0, 0)),
            pl.BlockSpec((5, Wmax), lambda i: (0, 0)),
        ],
        out_specs=pl.BlockSpec((Bt, HW, Cp), lambda i: (i, 0, 0)),
        compiler_params=pltpu.CompilerParams(
            dimension_semantics=("parallel",),
            vmem_limit_bytes=vmem_limit,
        ),
    )(x, w_ch, wz, w_sp, vecs)

    return out[:, :, :C].reshape(B, H, W, C)


def psa_forward(x_nchw, params):
    """PSA with the PyTorch NCHW convention."""
    # TODO(synk): if the surrounding model carries NHWC, call psa_forward_nhwc
    # directly and drop these two full-tensor HBM transposes.
    B, C, H, W = x_nchw.shape
    packed, dims = prepare_params(params, C)
    x_nhwc = jnp.transpose(x_nchw, (0, 2, 3, 1))
    out = psa_forward_nhwc(x_nhwc, packed, dims)
    return jnp.transpose(out, (0, 3, 1, 2))


# ----------------------------------------------------------------------------
# Pure-JAX NCHW reference mirroring the PyTorch forward.
# ----------------------------------------------------------------------------
def psa_reference(x, params):
    (wv_ch, bv_ch, wq_ch, bq_ch, wz_ch, bz_ch, gamma, beta,
     wv_sp, bv_sp, wq_sp, bq_sp) = params
    B, C, H, W = x.shape
    C2 = C // 2

    def conv1x1(t, w, b):  # w: (Cin, Cout), b: (1, Cout)
        return jnp.einsum('bchw,co->bohw', t, w) + b.reshape(1, -1, 1, 1)

    ch_v = conv1x1(x, wv_ch, bv_ch).reshape(B, C2, H * W)
    ch_q = (jnp.einsum('bchw,c->bhw', x, wq_ch[0]) + bq_ch[0, 0]).reshape(B, H * W, 1)
    ch_q = jax.nn.softmax(ch_q, axis=1)
    ch_z = jnp.matmul(ch_v, ch_q)[..., None]                     # (B, C2, 1, 1)
    z = conv1x1(ch_z, wz_ch, bz_ch)                              # (B, C, 1, 1)
    mu = jnp.mean(z, axis=(1, 2, 3), keepdims=True)
    var = jnp.mean((z - mu) ** 2, axis=(1, 2, 3), keepdims=True)
    z = (z - mu) / jnp.sqrt(var + 1e-5)
    z = z * gamma.reshape(1, C, 1, 1) + beta.reshape(1, C, 1, 1)
    ch_score = jax.nn.sigmoid(z)
    ch_out = ch_score * x
    sp_v = conv1x1(ch_out, wv_sp, bv_sp).reshape(B, C2, H * W)
    sp_q = jnp.mean(conv1x1(ch_out, wq_sp, bq_sp), axis=(2, 3)).reshape(B, 1, C2)
    sp_q = jax.nn.softmax(sp_q, axis=-1)
    sp_z = jnp.matmul(sp_q, sp_v)                                # (B, 1, HW)
    sp_score = jax.nn.sigmoid(sp_z.reshape(B, 1, H, W))
    return sp_score * ch_out


if __name__ == "__main__":
    B, C, H, W = 2, 64, 8, 8
    C2 = C // 2
    key = jax.random.PRNGKey(0)
    ks = jax.random.split(key, 13)
    s = 0.1
    wv_ch = jax.random.normal(ks[0], (C, C2), jnp.float32) * s
    bv_ch = jax.random.normal(ks[1], (1, C2), jnp.float32) * s
    wq_ch = jax.random.normal(ks[2], (1, C), jnp.float32) * s
    bq_ch = jax.random.normal(ks[3], (1, 1), jnp.float32) * s
    wz_ch = jax.random.normal(ks[4], (C2, C), jnp.float32) * s
    bz_ch = jax.random.normal(ks[5], (1, C), jnp.float32) * s
    gamma = jnp.ones((1, C), jnp.float32) + jax.random.normal(ks[6], (1, C), jnp.float32) * 0.05
    beta = jax.random.normal(ks[7], (1, C), jnp.float32) * 0.05
    wv_sp = jax.random.normal(ks[8], (C, C2), jnp.float32) * s
    bv_sp = jax.random.normal(ks[9], (1, C2), jnp.float32) * s
    wq_sp = jax.random.normal(ks[10], (C, C2), jnp.float32) * s
    bq_sp = jax.random.normal(ks[11], (1, C2), jnp.float32) * s
    x = jax.random.normal(ks[12], (B, C, H, W), jnp.float32)

    params = (wv_ch, bv_ch, wq_ch, bq_ch, wz_ch, bz_ch, gamma, beta,
              wv_sp, bv_sp, wq_sp, bq_sp)

    out = psa_forward(x, params)
    jax.block_until_ready(out)

    ref = psa_reference(x, params)
    assert out.shape == x.shape
    max_err = float(jnp.max(jnp.abs(out - ref)))
    # Tolerance accounts for the approximate EUP reciprocal used in the two
    # softmax denominators (pl.reciprocal(approx=True)); math is otherwise f32.
    assert jnp.allclose(out, ref, atol=2e-3, rtol=1e-2), f"max abs err = {max_err}"
    print("KERNEL_OK")
</pallas_src>

<mosaic_0001>
module attributes {stable_mosaic.version = 11 : i64} {
  func.func @kernel(%arg0: i32, %arg1: memref<2x64x128xf32, #tpu.memory_space<vmem>>, %arg2: memref<128x128xf32, #tpu.memory_space<vmem>>, %arg3: memref<128x128xf32, #tpu.memory_space<vmem>>, %arg4: memref<128x256xf32, #tpu.memory_space<vmem>>, %arg5: memref<5x256xf32, #tpu.memory_space<vmem>>, %arg6: memref<2x64x128xf32, #tpu.memory_space<vmem>>) attributes {dimension_semantics = [#tpu.dimension_semantics<parallel>], iteration_bounds = array<i64: 1>, scalar_prefetch = 0 : i64, scratch_operands = 0 : i64, tpu.core_type = #tpu.core_type<tc>, window_params = [{transform_indices = @transform_0, window_bounds = array<i64: 2, 64, 128>}, {pipeline_mode = #tpu.pipeline_mode<synchronous>, transform_indices = @transform_1, window_bounds = array<i64: 128, 128>}, {pipeline_mode = #tpu.pipeline_mode<synchronous>, transform_indices = @transform_2, window_bounds = array<i64: 128, 128>}, {pipeline_mode = #tpu.pipeline_mode<synchronous>, transform_indices = @transform_3, window_bounds = array<i64: 128, 256>}, {pipeline_mode = #tpu.pipeline_mode<synchronous>, transform_indices = @transform_4, window_bounds = array<i64: 5, 256>}, {transform_indices = @transform_5, window_bounds = array<i64: 2, 64, 128>}]} {
    %c0 = arith.constant 0 : index
    %c0_0 = arith.constant 0 : index
    %0 = vector.load %arg2[%c0, %c0_0] : memref<128x128xf32, #tpu.memory_space<vmem>>, vector<128x128xf32>
    %c0_1 = arith.constant 0 : index
    %c0_2 = arith.constant 0 : index
    %1 = vector.load %arg3[%c0_1, %c0_2] : memref<128x128xf32, #tpu.memory_space<vmem>>, vector<128x128xf32>
    %c0_3 = arith.constant 0 : index
    %c0_4 = arith.constant 0 : index
    %2 = vector.load %arg4[%c0_3, %c0_4] : memref<128x256xf32, #tpu.memory_space<vmem>>, vector<128x256xf32>
    %c0_5 = arith.constant 0 : index
    %c0_6 = arith.constant 0 : index
    %3 = vector.load %arg5[%c0_5, %c0_6] : memref<5x256xf32, #tpu.memory_space<vmem>>, vector<1x128xf32>
    %c1 = arith.constant 1 : index
    %c0_7 = arith.constant 0 : index
    %4 = vector.load %arg5[%c1, %c0_7] : memref<5x256xf32, #tpu.memory_space<vmem>>, vector<1x128xf32>
    %c2 = arith.constant 2 : index
    %c0_8 = arith.constant 0 : index
    %5 = vector.load %arg5[%c2, %c0_8] : memref<5x256xf32, #tpu.memory_space<vmem>>, vector<1x128xf32>
    %c3 = arith.constant 3 : index
    %c0_9 = arith.constant 0 : index
    %6 = vector.load %arg5[%c3, %c0_9] : memref<5x256xf32, #tpu.memory_space<vmem>>, vector<1x128xf32>
    %c4 = arith.constant 4 : index
    %c0_10 = arith.constant 0 : index
    %7 = vector.load %arg5[%c4, %c0_10] : memref<5x256xf32, #tpu.memory_space<vmem>>, vector<1x256xf32>
    %8 = tpu.iota {dimensions = array<i32: 1>} : vector<1x128xi32>
    %c64_i32 = arith.constant 64 : i32
    %9 = vector.broadcast %c64_i32 : i32 to vector<1x128xi32>
    %10 = arith.cmpi slt, %8, %9 : vector<1x128xi32>
    %11 = tpu.iota {dimensions = array<i32: 1>} : vector<1x128xi32>
    %c32_i32 = arith.constant 32 : i32
    %12 = vector.broadcast %c32_i32 : i32 to vector<1x128xi32>
    %13 = arith.cmpi slt, %11, %12 : vector<1x128xi32>
    %c0_11 = arith.constant 0 : index
    %c0_12 = arith.constant 0 : index
    %c0_13 = arith.constant 0 : index
    %14 = vector.load %arg1[%c0_11, %c0_12, %c0_13] : memref<2x64x128xf32, #tpu.memory_space<vmem>>, vector<1x64x128xf32>
    %15 = vector.shape_cast %14 : vector<1x64x128xf32> to vector<64x128xf32>
    %cst = arith.constant dense<0.000000e+00> : vector<64x128xf32>
    %16 = tpu.matmul %15, %0, %cst {dimension_numbers = #tpu.dot_dimension_numbers<[1], [0], [0], [1], [0, 0, 1, 1], [], []>} : vector<64x128xf32>, vector<128x128xf32>, vector<64x128xf32> -> vector<64x128xf32>
    %17 = vector.broadcast %3 : vector<1x128xf32> to vector<64x128xf32>
    %18 = arith.addf %16, %17 : vector<64x128xf32>
    %19 = vector.extract_strided_slice %18 {offsets = [0, 32], sizes = [64, 1], strides = [1, 1]} : vector<64x128xf32> to vector<64x1xf32>
    %cst_14 = arith.constant dense<0xFF800000> : vector<1xf32>
    %20 = vector.multi_reduction <maximumf>, %19, %cst_14 [0] : vector<64x1xf32> to vector<1xf32>
    %21 = vector.shape_cast %20 : vector<1xf32> to vector<1x1xf32>
    %22 = vector.broadcast %21 : vector<1x1xf32> to vector<64x1xf32>
    %23 = arith.subf %19, %22 : vector<64x1xf32>
    %24 = math.exp %23 : vector<64x1xf32>
    %cst_15 = arith.constant dense<0.000000e+00> : vector<1xf32>
    %25 = vector.multi_reduction <add>, %24, %cst_15 [0] : vector<64x1xf32> to vector<1xf32>
    %26 = vector.shape_cast %25 : vector<1xf32> to vector<1x1xf32>
    %27 = tpu.reciprocal %26 {approx = true} : vector<1x1xf32> -> vector<1x1xf32>
    %28 = vector.broadcast %27 : vector<1x1xf32> to vector<64x1xf32>
    %29 = arith.mulf %24, %28 : vector<64x1xf32>
    %30 = vector.broadcast %29 : vector<64x1xf32> to vector<64x128xf32>
    %31 = arith.mulf %18, %30 : vector<64x128xf32>
    %cst_16 = arith.constant dense<0.000000e+00> : vector<128xf32>
    %32 = vector.multi_reduction <add>, %31, %cst_16 [0] : vector<64x128xf32> to vector<128xf32>
    %33 = vector.shape_cast %32 : vector<128xf32> to vector<1x128xf32>
    %cst_17 = arith.constant dense<0.000000e+00> : vector<1x128xf32>
    %34 = tpu.matmul %33, %1, %cst_17 {dimension_numbers = #tpu.dot_dimension_numbers<[1], [0], [0], [1], [0, 0, 1, 1], [], []>} : vector<1x128xf32>, vector<128x128xf32>, vector<1x128xf32> -> vector<1x128xf32>
    %35 = arith.addf %34, %4 : vector<1x128xf32>
    %cst_18 = arith.constant dense<0.000000e+00> : vector<1xf32>
    %36 = vector.multi_reduction <add>, %35, %cst_18 [1] : vector<1x128xf32> to vector<1xf32>
    %37 = vector.shape_cast %36 : vector<1xf32> to vector<1x1xf32>
    %cst_19 = arith.constant 1.562500e-02 : f32
    %38 = vector.broadcast %cst_19 : f32 to vector<1x1xf32>
    %39 = arith.mulf %37, %38 : vector<1x1xf32>
    %40 = vector.broadcast %39 : vector<1x1xf32> to vector<1x128xf32>
    %41 = arith.subf %35, %40 : vector<1x128xf32>
    %cst_20 = arith.constant 0.000000e+00 : f32
    %42 = vector.broadcast %cst_20 : f32 to vector<1x128xf32>
    %43 = arith.select %10, %41, %42 : vector<1x128xi1>, vector<1x128xf32>
    %44 = arith.mulf %43, %43 : vector<1x128xf32>
    %cst_21 = arith.constant dense<0.000000e+00> : vector<1xf32>
    %45 = vector.multi_reduction <add>, %44, %cst_21 [1] : vector<1x128xf32> to vector<1xf32>
    %46 = vector.shape_cast %45 : vector<1xf32> to vector<1x1xf32>
    %cst_22 = arith.constant 1.562500e-02 : f32
    %47 = vector.broadcast %cst_22 : f32 to vector<1x1xf32>
    %48 = arith.mulf %46, %47 : vector<1x1xf32>
    %cst_23 = arith.constant 9.99999974E-6 : f32
    %49 = vector.broadcast %cst_23 : f32 to vector<1x1xf32>
    %50 = arith.addf %48, %49 : vector<1x1xf32>
    %51 = math.rsqrt %50 : vector<1x1xf32>
    %52 = vector.broadcast %51 : vector<1x1xf32> to vector<1x128xf32>
    %53 = arith.mulf %43, %52 : vector<1x128xf32>
    %54 = arith.mulf %53, %5 : vector<1x128xf32>
    %55 = arith.addf %54, %6 : vector<1x128xf32>
    %56 = arith.negf %55 : vector<1x128xf32>
    %57 = math.exp %56 : vector<1x128xf32>
    %cst_24 = arith.constant 1.000000e+00 : f32
    %58 = vector.broadcast %cst_24 : f32 to vector<1x128xf32>
    %59 = arith.addf %58, %57 : vector<1x128xf32>
    %60 = arith.divf %58, %59 : vector<1x128xf32>
    %61 = vector.broadcast %60 : vector<1x128xf32> to vector<64x128xf32>
    %62 = arith.mulf %61, %15 : vector<64x128xf32>
    %cst_25 = arith.constant dense<0.000000e+00> : vector<64x256xf32>
    %63 = tpu.matmul %62, %2, %cst_25 {dimension_numbers = #tpu.dot_dimension_numbers<[1], [0], [0], [1], [0, 0, 1, 1], [], []>} : vector<64x128xf32>, vector<128x256xf32>, vector<64x256xf32> -> vector<64x256xf32>
    %64 = vector.broadcast %7 : vector<1x256xf32> to vector<64x256xf32>
    %65 = arith.addf %63, %64 : vector<64x256xf32>
    %66 = vector.extract_strided_slice %65 {offsets = [0, 0], sizes = [64, 128], strides = [1, 1]} : vector<64x256xf32> to vector<64x128xf32>
    %67 = vector.extract_strided_slice %65 {offsets = [0, 128], sizes = [64, 128], strides = [1, 1]} : vector<64x256xf32> to vector<64x128xf32>
    %cst_26 = arith.constant dense<0.000000e+00> : vector<128xf32>
    %68 = vector.multi_reduction <add>, %67, %cst_26 [0] : vector<64x128xf32> to vector<128xf32>
    %69 = vector.shape_cast %68 : vector<128xf32> to vector<1x128xf32>
    %cst_27 = arith.constant 6.400000e+01 : f32
    %70 = vector.broadcast %cst_27 : f32 to vector<1x128xf32>
    %71 = arith.divf %69, %70 : vector<1x128xf32>
    %cst_28 = arith.constant -1.000000e+30 : f32
    %72 = vector.broadcast %cst_28 : f32 to vector<1x128xf32>
    %73 = arith.select %13, %71, %72 : vector<1x128xi1>, vector<1x128xf32>
    %cst_29 = arith.constant dense<0xFF800000> : vector<1xf32>
    %74 = vector.multi_reduction <maximumf>, %73, %cst_29 [1] : vector<1x128xf32> to vector<1xf32>
    %75 = vector.shape_cast %74 : vector<1xf32> to vector<1x1xf32>
    %76 = vector.broadcast %75 : vector<1x1xf32> to vector<1x128xf32>
    %77 = arith.subf %73, %76 : vector<1x128xf32>
    %78 = math.exp %77 : vector<1x128xf32>
    %cst_30 = arith.constant dense<0.000000e+00> : vector<1xf32>
    %79 = vector.multi_reduction <add>, %78, %cst_30 [1] : vector<1x128xf32> to vector<1xf32>
    %80 = vector.shape_cast %79 : vector<1xf32> to vector<1x1xf32>
    %81 = tpu.reciprocal %80 {approx = true} : vector<1x1xf32> -> vector<1x1xf32>
    %82 = vector.broadcast %81 : vector<1x1xf32> to vector<1x128xf32>
    %83 = arith.mulf %78, %82 : vector<1x128xf32>
    %cst_31 = arith.constant dense<0.000000e+00> : vector<64x1xf32>
    %84 = tpu.matmul %66, %83, %cst_31 {dimension_numbers = #tpu.dot_dimension_numbers<[1], [1], [0], [0], [0, 0, 1, 0], [], []>} : vector<64x128xf32>, vector<1x128xf32>, vector<64x1xf32> -> vector<64x1xf32>
    %85 = arith.negf %84 : vector<64x1xf32>
    %86 = math.exp %85 : vector<64x1xf32>
    %cst_32 = arith.constant 1.000000e+00 : f32
    %87 = vector.broadcast %cst_32 : f32 to vector<64x1xf32>
    %88 = arith.addf %87, %86 : vector<64x1xf32>
    %89 = arith.divf %87, %88 : vector<64x1xf32>
    %90 = vector.broadcast %89 : vector<64x1xf32> to vector<64x128xf32>
    %91 = arith.mulf %90, %62 : vector<64x128xf32>
    %c0_33 = arith.constant 0 : index
    %c0_34 = arith.constant 0 : index
    %c0_35 = arith.constant 0 : index
    %92 = vector.load %arg6[%c0_33, %c0_34, %c0_35] : memref<2x64x128xf32, #tpu.memory_space<vmem>>, vector<1x64x128xf32>
    %93 = vector.shape_cast %92 : vector<1x64x128xf32> to vector<64x128xf32>
    %94 = vector.shape_cast %91 : vector<64x128xf32> to vector<1x64x128xf32>
    tpu.vector_store %arg6[%c0_33, %c0_34, %c0_35], %94 {strides = array<i32>} : memref<2x64x128xf32, #tpu.memory_space<vmem>>, vector<1x64x128xf32>,
    %c1_36 = arith.constant 1 : index
    %c0_37 = arith.constant 0 : index
    %c0_38 = arith.constant 0 : index
    %95 = vector.load %arg1[%c1_36, %c0_37, %c0_38] : memref<2x64x128xf32, #tpu.memory_space<vmem>>, vector<1x64x128xf32>
    %96 = vector.shape_cast %95 : vector<1x64x128xf32> to vector<64x128xf32>
    %cst_39 = arith.constant dense<0.000000e+00> : vector<64x128xf32>
    %97 = tpu.matmul %96, %0, %cst_39 {dimension_numbers = #tpu.dot_dimension_numbers<[1], [0], [0], [1], [0, 0, 1, 1], [], []>} : vector<64x128xf32>, vector<128x128xf32>, vector<64x128xf32> -> vector<64x128xf32>
    %98 = vector.broadcast %3 : vector<1x128xf32> to vector<64x128xf32>
    %99 = arith.addf %97, %98 : vector<64x128xf32>
    %100 = vector.extract_strided_slice %99 {offsets = [0, 32], sizes = [64, 1], strides = [1, 1]} : vector<64x128xf32> to vector<64x1xf32>
    %cst_40 = arith.constant dense<0xFF800000> : vector<1xf32>
    %101 = vector.multi_reduction <maximumf>, %100, %cst_40 [0] : vector<64x1xf32> to vector<1xf32>
    %102 = vector.shape_cast %101 : vector<1xf32> to vector<1x1xf32>
    %103 = vector.broadcast %102 : vector<1x1xf32> to vector<64x1xf32>
    %104 = arith.subf %100, %103 : vector<64x1xf32>
    %105 = math.exp %104 : vector<64x1xf32>
    %cst_41 = arith.constant dense<0.000000e+00> : vector<1xf32>
    %106 = vector.multi_reduction <add>, %105, %cst_41 [0] : vector<64x1xf32> to vector<1xf32>
    %107 = vector.shape_cast %106 : vector<1xf32> to vector<1x1xf32>
    %108 = tpu.reciprocal %107 {approx = true} : vector<1x1xf32> -> vector<1x1xf32>
    %109 = vector.broadcast %108 : vector<1x1xf32> to vector<64x1xf32>
    %110 = arith.mulf %105, %109 : vector<64x1xf32>
    %111 = vector.broadcast %110 : vector<64x1xf32> to vector<64x128xf32>
    %112 = arith.mulf %99, %111 : vector<64x128xf32>
    %cst_42 = arith.constant dense<0.000000e+00> : vector<128xf32>
    %113 = vector.multi_reduction <add>, %112, %cst_42 [0] : vector<64x128xf32> to vector<128xf32>
    %114 = vector.shape_cast %113 : vector<128xf32> to vector<1x128xf32>
    %cst_43 = arith.constant dense<0.000000e+00> : vector<1x128xf32>
    %115 = tpu.matmul %114, %1, %cst_43 {dimension_numbers = #tpu.dot_dimension_numbers<[1], [0], [0], [1], [0, 0, 1, 1], [], []>} : vector<1x128xf32>, vector<128x128xf32>, vector<1x128xf32> -> vector<1x128xf32>
    %116 = arith.addf %115, %4 : vector<1x128xf32>
    %cst_44 = arith.constant dense<0.000000e+00> : vector<1xf32>
    %117 = vector.multi_reduction <add>, %116, %cst_44 [1] : vector<1x128xf32> to vector<1xf32>
    %118 = vector.shape_cast %117 : vector<1xf32> to vector<1x1xf32>
    %cst_45 = arith.constant 1.562500e-02 : f32
    %119 = vector.broadcast %cst_45 : f32 to vector<1x1xf32>
    %120 = arith.mulf %118, %119 : vector<1x1xf32>
    %121 = vector.broadcast %120 : vector<1x1xf32> to vector<1x128xf32>
    %122 = arith.subf %116, %121 : vector<1x128xf32>
    %cst_46 = arith.constant 0.000000e+00 : f32
    %123 = vector.broadcast %cst_46 : f32 to vector<1x128xf32>
    %124 = arith.select %10, %122, %123 : vector<1x128xi1>, vector<1x128xf32>
    %125 = arith.mulf %124, %124 : vector<1x128xf32>
    %cst_47 = arith.constant dense<0.000000e+00> : vector<1xf32>
    %126 = vector.multi_reduction <add>, %125, %cst_47 [1] : vector<1x128xf32> to vector<1xf32>
    %127 = vector.shape_cast %126 : vector<1xf32> to vector<1x1xf32>
    %cst_48 = arith.constant 1.562500e-02 : f32
    %128 = vector.broadcast %cst_48 : f32 to vector<1x1xf32>
    %129 = arith.mulf %127, %128 : vector<1x1xf32>
    %cst_49 = arith.constant 9.99999974E-6 : f32
    %130 = vector.broadcast %cst_49 : f32 to vector<1x1xf32>
    %131 = arith.addf %129, %130 : vector<1x1xf32>
    %132 = math.rsqrt %131 : vector<1x1xf32>
    %133 = vector.broadcast %132 : vector<1x1xf32> to vector<1x128xf32>
    %134 = arith.mulf %124, %133 : vector<1x128xf32>
    %135 = arith.mulf %134, %5 : vector<1x128xf32>
    %136 = arith.addf %135, %6 : vector<1x128xf32>
    %137 = arith.negf %136 : vector<1x128xf32>
    %138 = math.exp %137 : vector<1x128xf32>
    %cst_50 = arith.constant 1.000000e+00 : f32
    %139 = vector.broadcast %cst_50 : f32 to vector<1x128xf32>
    %140 = arith.addf %139, %138 : vector<1x128xf32>
    %141 = arith.divf %139, %140 : vector<1x128xf32>
    %142 = vector.broadcast %141 : vector<1x128xf32> to vector<64x128xf32>
    %143 = arith.mulf %142, %96 : vector<64x128xf32>
    %cst_51 = arith.constant dense<0.000000e+00> : vector<64x256xf32>
    %144 = tpu.matmul %143, %2, %cst_51 {dimension_numbers = #tpu.dot_dimension_numbers<[1], [0], [0], [1], [0, 0, 1, 1], [], []>} : vector<64x128xf32>, vector<128x256xf32>, vector<64x256xf32> -> vector<64x256xf32>
    %145 = vector.broadcast %7 : vector<1x256xf32> to vector<64x256xf32>
    %146 = arith.addf %144, %145 : vector<64x256xf32>
    %147 = vector.extract_strided_slice %146 {offsets = [0, 0], sizes = [64, 128], strides = [1, 1]} : vector<64x256xf32> to vector<64x128xf32>
    %148 = vector.extract_strided_slice %146 {offsets = [0, 128], sizes = [64, 128], strides = [1, 1]} : vector<64x256xf32> to vector<64x128xf32>
    %cst_52 = arith.constant dense<0.000000e+00> : vector<128xf32>
    %149 = vector.multi_reduction <add>, %148, %cst_52 [0] : vector<64x128xf32> to vector<128xf32>
    %150 = vector.shape_cast %149 : vector<128xf32> to vector<1x128xf32>
    %cst_53 = arith.constant 6.400000e+01 : f32
    %151 = vector.broadcast %cst_53 : f32 to vector<1x128xf32>
    %152 = arith.divf %150, %151 : vector<1x128xf32>
    %cst_54 = arith.constant -1.000000e+30 : f32
    %153 = vector.broadcast %cst_54 : f32 to vector<1x128xf32>
    %154 = arith.select %13, %152, %153 : vector<1x128xi1>, vector<1x128xf32>
    %cst_55 = arith.constant dense<0xFF800000> : vector<1xf32>
    %155 = vector.multi_reduction <maximumf>, %154, %cst_55 [1] : vector<1x128xf32> to vector<1xf32>
    %156 = vector.shape_cast %155 : vector<1xf32> to vector<1x1xf32>
    %157 = vector.broadcast %156 : vector<1x1xf32> to vector<1x128xf32>
    %158 = arith.subf %154, %157 : vector<1x128xf32>
    %159 = math.exp %158 : vector<1x128xf32>
    %cst_56 = arith.constant dense<0.000000e+00> : vector<1xf32>
    %160 = vector.multi_reduction <add>, %159, %cst_56 [1] : vector<1x128xf32> to vector<1xf32>
    %161 = vector.shape_cast %160 : vector<1xf32> to vector<1x1xf32>
    %162 = tpu.reciprocal %161 {approx = true} : vector<1x1xf32> -> vector<1x1xf32>
    %163 = vector.broadcast %162 : vector<1x1xf32> to vector<1x128xf32>
    %164 = arith.mulf %159, %163 : vector<1x128xf32>
    %cst_57 = arith.constant dense<0.000000e+00> : vector<64x1xf32>
    %165 = tpu.matmul %147, %164, %cst_57 {dimension_numbers = #tpu.dot_dimension_numbers<[1], [1], [0], [0], [0, 0, 1, 0], [], []>} : vector<64x128xf32>, vector<1x128xf32>, vector<64x1xf32> -> vector<64x1xf32>
    %166 = arith.negf %165 : vector<64x1xf32>
    %167 = math.exp %166 : vector<64x1xf32>
    %cst_58 = arith.constant 1.000000e+00 : f32
    %168 = vector.broadcast %cst_58 : f32 to vector<64x1xf32>
    %169 = arith.addf %168, %167 : vector<64x1xf32>
    %170 = arith.divf %168, %169 : vector<64x1xf32>
    %171 = vector.broadcast %170 : vector<64x1xf32> to vector<64x128xf32>
    %172 = arith.mulf %171, %143 : vector<64x128xf32>
    %c1_59 = arith.constant 1 : index
    %c0_60 = arith.constant 0 : index
    %c0_61 = arith.constant 0 : index
    %173 = vector.load %arg6[%c1_59, %c0_60, %c0_61] : memref<2x64x128xf32, #tpu.memory_space<vmem>>, vector<1x64x128xf32>
    %174 = vector.shape_cast %173 : vector<1x64x128xf32> to vector<64x128xf32>
    %175 = vector.shape_cast %172 : vector<64x128xf32> to vector<1x64x128xf32>
    tpu.vector_store %arg6[%c1_59, %c0_60, %c0_61], %175 {strides = array<i32>} : memref<2x64x128xf32, #tpu.memory_space<vmem>>, vector<1x64x128xf32>,
    return
  }
  func.func @transform_0(%arg0: i32) -> (i32, i32, i32) {
    %c0_i32 = arith.constant 0 : i32
    %c0_i32_0 = arith.constant 0 : i32
    %c0_i32_1 = arith.constant 0 : i32
    return %arg0, %c0_i32, %c0_i32_0 : i32, i32, i32
  }
  func.func @transform_1(%arg0: i32) -> (i32, i32) {
    %c0_i32 = arith.constant 0 : i32
    %c0_i32_0 = arith.constant 0 : i32
    %c0_i32_1 = arith.constant 0 : i32
    return %c0_i32, %c0_i32_0 : i32, i32
  }
  func.func @transform_2(%arg0: i32) -> (i32, i32) {
    %c0_i32 = arith.constant 0 : i32
    %c0_i32_0 = arith.constant 0 : i32
    %c0_i32_1 = arith.constant 0 : i32
    return %c0_i32, %c0_i32_0 : i32, i32
  }
  func.func @transform_3(%arg0: i32) -> (i32, i32) {
    %c0_i32 = arith.constant 0 : i32
    %c0_i32_0 = arith.constant 0 : i32
    %c0_i32_1 = arith.constant 0 : i32
    return %c0_i32, %c0_i32_0 : i32, i32
  }
  func.func @transform_4(%arg0: i32) -> (i32, i32) {
    %c0_i32 = arith.constant 0 : i32
    %c0_i32_0 = arith.constant 0 : i32
    %c0_i32_1 = arith.constant 0 : i32
    return %c0_i32, %c0_i32_0 : i32, i32
  }
  func.func @transform_5(%arg0: i32) -> (i32, i32, i32) {
    %c0_i32 = arith.constant 0 : i32
    %c0_i32_0 = arith.constant 0 : i32
    %c0_i32_1 = arith.constant 0 : i32
    return %arg0, %c0_i32, %c0_i32_0 : i32, i32, i32
  }
}

</mosaic_0001>

<bundles_post_ra>
// kernel: tpu_custom_call.1
= control target key start
LH: loop header
LB: loop body
LE: loop exit
PB: predicated region body
PF: predicated region fallthrough
CT: control target
= control target key end

     0   :  { %10 = vsyncpa [#allocation3], 0  ;;  %s2602_s0 = inlined_call_operand.hbm [shape: f32[2,64,128], index: 0, kind: input, shape index: {}]   ;;  %s2603_s1 = inlined_call_operand.hbm [shape: f32[128,128], index: 1, kind: input, shape index: {}]   ;;  %s2604_s2 = inlined_call_operand.hbm [shape: f32[128,128], index: 2, kind: input, shape index: {}]   ;;  %s2605_s3 = inlined_call_operand.hbm [shape: f32[128,256], index: 3, kind: input, shape index: {}]   ;;  %s2606_s4 = inlined_call_operand.hbm [shape: f32[5,256], index: 4, kind: input, shape index: {}]   ;;  %s2607_s5 = inlined_call_operand.hbm [shape: f32[2,64,128], index: 5, kind: output, shape index: {}]  }
   0x1   :  { %11 = vsyncpa [#allocation6], 0 }
   0x2   :  { %12 = vsyncpa [#allocation9], 0 }
   0x3   :  { %13 = vsyncpa [#allocation4], 0  ;;  %s31_s20 = sshll.u32 %s2603_s1, 4  ;;  %s1683_s21 = smov [#allocation5]   ;;  %s32_s20 = int_to_ptr.hbm [resolvable:$true] %s31_s20 }
   0x4   :  { %s33_s22 = sshll.u32 %s1683_s21, 4  ;;  %s57_s25 = sshll.u32 %s2605_s3, 4  ;;  %s34_s22 = int_to_ptr.vmem [resolvable:$true] %s33_s22  ;;  %s58_s25 = int_to_ptr.hbm [resolvable:$true] %s57_s25 }
   0x5   :  { %s1684_s26 = smov 128   ;;  %s1685_s27 = smov 8  }
   0x6   :  { %39 = dma.hbm_to_vmem [thread:$0]  %s32_s20, 2048, %s34_s22, [#allocation6], %s1684_s26, %s1684_s26, %s1685_s27  }
   0x7   :  { %s1686_s28 = smov [#allocation8]   ;;  %s1687_s30 = smov 256  }
   0x8   :  { %s59_s29 = sshll.u32 %s1686_s28, 4  ;;  %s1688_s1 = smov 16   ;;  %s60_s29 = int_to_ptr.vmem [resolvable:$true] %s59_s29 }
   0x9   :  { %65 = dma.hbm_to_vmem [thread:$0]  %s58_s25, 4096, %s60_s29, [#allocation9], %s1687_s30, %s1687_s30, %s1688_s1  }
   0xa   :  { %s18_s8 = sshll.u32 %s2602_s0, 4  ;;  %s1689_s9 = smov [#allocation2]   ;;  %s19_s8 = int_to_ptr.hbm [resolvable:$true] %s18_s8 }
   0xb   :  { %s20_s3 = sshll.u32 %s1689_s9, 4  ;;  %s44_s12 = sshll.u32 %s2604_s2, 4  ;;  %s21_s3 = int_to_ptr.vmem [resolvable:$true] %s20_s3  ;;  %s45_s12 = int_to_ptr.hbm [resolvable:$true] %s44_s12 }
   0xc   :  { %26 = dma.hbm_to_vmem [thread:$0]  %s19_s8, 2048, %s21_s3, [#allocation3], %s1684_s26, %s1684_s26, %s1685_s27  }
   0xd   :  { %s1690_s13 = smov [#allocation7]   ;;  %s71_s17 = sshll.u32 %s2606_s4, 4  ;;  %s72_s17 = int_to_ptr.hbm [resolvable:$true] %s71_s17 }
   0xe   :  { %s46_s14 = sshll.u32 %s1690_s13, 4  ;;  %s1691_s0 = smov [#allocation10]   ;;  %s47_s14 = int_to_ptr.vmem [resolvable:$true] %s46_s14 }
   0xf   :  { %52 = dma.hbm_to_vmem [thread:$0]  %s45_s12, 2048, %s47_s14, [#allocation6], %s1684_s26, %s1684_s26, %s1685_s27  }
  0x10   :  { %s73_s18 = sshll.u32 %s1691_s0, 4  ;;  %s74_s18 = int_to_ptr.vmem [resolvable:$true] %s73_s18 }
  0x11   :  { %76 = dma.hbm_to_vmem [thread:$0]  %s72_s17, 256, %s74_s18, [#allocation9]  }
  0x12   :  { %1675 = dma.done.wait [#allocation3], 2048  }
  0x13   :  { %1676 = vsyncadd [#allocation3], 4294965248 }
  0x14   :  { %1677 = dma.done.wait [#allocation6], 4096  }
  0x15   :  { %1678 = vsyncadd [#allocation6], 4294963200 }
  0x16   :  { %1679 = dma.done.wait [#allocation9], 4352  }
  0x17   :  { %1680 = vsyncadd [#allocation9], 4294962944  ;;  %v1749_v0 = vld [vmem:[#allocation5 + $0x78] sm:$0xff]  ;;  %v1751_v1 = vld [vmem:[#allocation5 + $0x70] sm:$0xff]  ;;  %vm220_vm0 = vcmask 269568   ;;  %v1692_v46 = vmov 32  }
  0x18   :  { %179 = vmatpush.msra.mxu0 %v1749_v0  ;;  %v1754_v2 = vld [vmem:[#allocation5 + $0x68] sm:$0xff]  ;;  %v1757_v3 = vld [vmem:[#allocation5 + $0x60] sm:$0xff]  ;;  %v1760_v4 = vld [vmem:[#allocation5 + $0x58] sm:$0xff]  ;;  %1400 = vset.pattern.permute.xlu2 %v1692_v46  ;;  %vm377_vm1 = vcmask 1040384   ;;  %s1694_s2 = smov [#allocation11]   ;;  %s1305_s21 = sshll.u32 %s2607_s5, 4  ;;  %s1306_s21 = int_to_ptr.hbm [resolvable:$true] %s1305_s21 }
  0x19   :  { %v1763_v5 = vld [vmem:[#allocation5 + $0x50] sm:$0xff]  ;;  %v1766_v6 = vld [vmem:[#allocation5 + $0x48] sm:$0xff]  ;;  %v1769_v7 = vld [vmem:[#allocation5 + $0x40] sm:$0xff]  ;;  %1399 = vset.pattern.permute.xlu1 %v1692_v46  ;;  %1398 = vset.pattern.permute.xlu0 %v1692_v46  ;;  %s1303_s4 = sshll.u32 %s1694_s2, 4  ;;  %s1304_s4 = int_to_ptr.vmem [resolvable:$true] %s1303_s4 }
  0x1a   :  { %180 = vmatpush.msra.mxu0 %v1751_v1  ;;  %v1772_v8 = vld [vmem:[#allocation5 + $0x38] sm:$0xff]  ;;  %v1775_v9 = vld [vmem:[#allocation5 + $0x30] sm:$0xff]  ;;  %v1778_v10 = vld [vmem:[#allocation5 + $0x28] sm:$0xff] }
  0x1b   :  { %v1781_v11 = vld [vmem:[#allocation5 + $0x20] sm:$0xff]  ;;  %v1784_v12 = vld [vmem:[#allocation5 + $0x18] sm:$0xff]  ;;  %v1787_v13 = vld [vmem:[#allocation5 + $0x10] sm:$0xff] }
  0x1c   :  { %181 = vmatpush.msra.mxu0 %v1754_v2  ;;  %v1790_v14 = vld [vmem:[#allocation5 + $0x8] sm:$0xff]  ;;  %v1793_v15 = vld [vmem:[#allocation5] sm:$0xff]  ;;  %v173_v18 = vld [vmem:[#allocation2 + $0x10] sm:$0xff] }
  0x1d   :  { %v171_v16 = vld [vmem:[#allocation2] sm:$0xff]  ;;  %v172_v17 = vld [vmem:[#allocation2 + $0x8] sm:$0xff]  ;;  %v174_v19 = vld [vmem:[#allocation2 + $0x18] sm:$0xff] }
  0x1e   :  { %182 = vmatpush.msra.mxu0 %v1757_v3  ;;  %v175_v20 = vld [vmem:[#allocation2 + $0x20] sm:$0xff]  ;;  %v176_v21 = vld [vmem:[#allocation2 + $0x28] sm:$0xff]  ;;  %v177_v22 = vld [vmem:[#allocation2 + $0x30] sm:$0xff] }
  0x1f   :  { %v178_v23 = vld [vmem:[#allocation2 + $0x38] sm:$0xff]  ;;  %v1797_v31 = vld [vmem:[#allocation10] ss:$0 sm:$0xff] }
  0x20   :  { %183 = vmatpush.msra.mxu0 %v1760_v4 }
  0x22   :  { %184 = vmatpush.msra.mxu0 %v1763_v5 }
  0x24   :  { %185 = vmatpush.msra.mxu0 %v1766_v6 }
  0x26   :  { %186 = vmatpush.msra.mxu0 %v1769_v7 }
  0x28   :  { %187 = vmatpush.msra.mxu0 %v1772_v8 }
  0x2a   :  { %188 = vmatpush.msra.mxu0 %v1775_v9 }
  0x2c   :  { %189 = vmatpush.msra.mxu0 %v1778_v10 }
  0x2e   :  { %190 = vmatpush.msra.mxu0 %v1781_v11 }
  0x30   :  { %191 = vmatpush.msra.mxu0 %v1784_v12 }
  0x32   :  { %192 = vmatpush.msra.mxu0 %v1787_v13 }
  0x34   :  { %193 = vmatpush.msra.mxu0 %v1790_v14 }
  0x36   :  { %194 = vmatpush.msra.mxu0 %v1793_v15 }
  0x37   :  { %195 = vmatmul.f32.vlgmr.msra.gmra.mxu0 %v171_v16 }
  0x3f   :  { %198 = vmatmul.f32.gmra.mxu0 %v172_v17 }
  0x47   :  { %201 = vmatmul.f32.gmra.mxu0 %v173_v18 }
  0x4f   :  { %204 = vmatmul.f32.gmra.mxu0 %v174_v19 }
  0x57   :  { %207 = vmatmul.f32.gmra.mxu0 %v175_v20 }
  0x5f   :  { %210 = vmatmul.f32.gmra.mxu0 %v176_v21 }
  0x67   :  { %213 = vmatmul.f32.gmra.mxu0 %v177_v22 }
  0x6f   :  { %216 = vmatmul.f32.gmra.mxu0 %v178_v23 }
  0xb4   :  { %v196_v24 = vpop.f32.mrf.mxu0 }
  0xb5   :  { %v1812_v36 = vadd.f32 %v196_v24, %v1797_v31 }
  0xb7   :  { %v221_v47 = vsel %vm220_vm0, %v1812_v36, -inf }
  0xbc   :  { %v199_v25 = vpop.f32.mrf.mxu0 }
  0xbd   :  { %v1803_v33 = vadd.f32 %v199_v25, %v1797_v31 }
  0xbf   :  { %v222_v40 = vsel %vm220_vm0, %v1803_v33, -inf }
  0xc4   :  { %v202_v26 = vpop.f32.mrf.mxu0 }
  0xc5   :  { %v1815_v37 = vadd.f32 %v202_v26, %v1797_v31 }
  0xc7   :  { %v223_v48 = vsel %vm220_vm0, %v1815_v37, -inf }
  0xcc   :  { %v205_v27 = vpop.f32.mrf.mxu0 }
  0xcd   :  { %v1818_v38 = vadd.f32 %v205_v27, %v1797_v31 }
  0xcf   :  { %v224_v49 = vsel %vm220_vm0, %v1818_v38, -inf }
  0xd4   :  { %v208_v28 = vpop.f32.mrf.mxu0 }
  0xd5   :  { %v1806_v34 = vadd.f32 %v208_v28, %v1797_v31 }
  0xd7   :  { %v225_v42 = vsel %vm220_vm0, %v1806_v34, -inf }
  0xd8   :  { %v226_v51 = vmax.f32 %v221_v47, %v225_v42 }
  0xdc   :  { %v211_v29 = vpop.f32.mrf.mxu0 }
  0xdd   :  { %v1800_v32 = vadd.f32 %v211_v29, %v1797_v31 }
  0xdf   :  { %v227_v39 = vsel %vm220_vm0, %v1800_v32, -inf }
  0xe0   :  { %v228_v45 = vmax.f32 %v222_v40, %v227_v39 }
  0xe2   :  { %v233_v54 = vmax.f32 %v226_v51, %v228_v45 }
  0xe4   :  { %v214_v30 = vpop.f32.mrf.mxu0 }
  0xe5   :  { %v1809_v35 = vadd.f32 %v214_v30, %v1797_v31 }
  0xe7   :  { %v229_v43 = vsel %vm220_vm0, %v1809_v35, -inf }
  0xe8   :  { %v230_v52 = vmax.f32 %v223_v48, %v229_v43 }
  0xec   :  { %v217_v41 = vpop.f32.mrf.mxu0 }
  0xed   :  { %v1829_v44 = vadd.f32 %v217_v41, %v1797_v31 }
  0xef   :  { %v231_v50 = vsel %vm220_vm0, %v1829_v44, -inf }
  0xf0   :  { %v232_v53 = vmax.f32 %v224_v49, %v231_v50 }
  0xf2   :  { %v234_v55 = vmax.f32 %v230_v52, %v232_v53 }
  0xf4   :  { %v235_v56 = vmax.f32 %v233_v54, %v234_v55 }
  0xf6   :  { %v236_v57 = vrot.slane %v235_v56, 4 }
  0xf8   :  { %v237_v58 = vmax.f32 %v235_v56, %v236_v57 }
  0xfa   :  { %v238_v59 = vrot.slane %v237_v58, 2 }
  0xfc   :  { %v239_v60 = vmax.f32 %v237_v58, %v238_v59 }
  0xfe   :  { %v240_v61 = vrot.slane %v239_v60, 1 }
 0x100   :  { %v241_v62 = vmax.f32 %v239_v60, %v240_v61 }
 0x102   :  { %v242_v63 = vsub.f32 %v1812_v36, %v241_v62  ;;  %v243_v16 = vsub.f32 %v1803_v33, %v241_v62  ;;  %v244_v17 = vsub.f32 %v1815_v37, %v241_v62  ;;  %v245_v18 = vsub.f32 %v1818_v38, %v241_v62 }
 0x103   :  { %v246_v19 = vsub.f32 %v1806_v34, %v241_v62  ;;  %v247_v23 = vsub.f32 %v1800_v32, %v241_v62  ;;  %v248_v25 = vsub.f32 %v1809_v35, %v241_v62  ;;  %v249_v27 = vsub.f32 %v1829_v44, %v241_v62 }
 0x104   :  { %v250_v20 = vmul.f32 1.442695, %v242_v63  ;;  %v252_v21 = vmul.f32 1.442695, %v243_v16  ;;  %v254_v22 = vmul.f32 1.442695, %v244_v17 }
 0x105   :  { %v256_v24 = vmul.f32 1.442695, %v245_v18  ;;  %v258_v26 = vmul.f32 1.442695, %v246_v19  ;;  %v260_v28 = vmul.f32 1.442695, %v247_v23 }
 0x106   :  { %1401 = vpow2.f32 %v250_v20  ;;  %v262_v29 = vmul.f32 1.442695, %v248_v25  ;;  %v264_v40 = vmul.f32 1.442695, %v249_v27 }
 0x107   :  { %1403 = vpow2.f32 %v252_v21 }
 0x108   :  { %1405 = vpow2.f32 %v254_v22 }
 0x109   :  { %1407 = vpow2.f32 %v256_v24 }
 0x10a   :  { %1409 = vpow2.f32 %v258_v26 }
 0x10b   :  { %1411 = vpow2.f32 %v260_v28 }
 0x10c   :  { %v1402_v30 = vpop.eup %1401  ;;  %1413 = vpow2.f32 %v262_v29 }
 0x10d   :  { %v1404_v39 = vpop.eup %1403  ;;  %v266_v41 = vsel %vm220_vm0, %v1402_v30, 0.0  ;;  %1415 = vpow2.f32 %v264_v40  ;;  %v1855_v40 = vld [vmem:[#allocation7 + $0x78] sm:$0xff] }
 0x10e   :  { %v1406_v42 = vpop.eup %1405  ;;  %v267_v43 = vsel %vm220_vm0, %v1404_v39, 0.0  ;;  %357 = vmatpush.msra.mxu1 %v1855_v40 }
 0x10f   :  { %v1408_v45 = vpop.eup %1407  ;;  %v268_v46 = vadd.f32 %v267_v43, %v266_v41  ;;  %v269_v47 = vsel %vm220_vm0, %v1406_v42, 0.0  ;;  %v1858_v41 = vld [vmem:[#allocation7 + $0x70] sm:$0xff] }
 0x110   :  { %v1410_v48 = vpop.eup %1409  ;;  %v271_v50 = vsel %vm220_vm0, %v1408_v45, 0.0  ;;  %358 = vmatpush.msra.mxu1 %v1858_v41  ;;  %v1869_v43 = vld [vmem:[#allocation7 + $0x50] sm:$0xff] }
 0x111   :  { %v270_v49 = vadd.f32 %v269_v47, %v268_v46  ;;  %v1412_v51 = vpop.eup %1411  ;;  %v273_v53 = vsel %vm220_vm0, %v1410_v48, 0.0  ;;  %v1875_v46 = vld [vmem:[#allocation7 + $0x40] sm:$0xff]  ;;  %v1878_v47 = vld [vmem:[#allocation7 + $0x38] sm:$0xff] }
 0x112   :  { %v1414_v54 = vpop.eup %1413  ;;  %v275_v56 = vsel %vm220_vm0, %v1412_v51, 0.0 }
 0x113   :  { %v272_v52 = vadd.f32 %v271_v50, %v270_v49  ;;  %v1416_v57 = vpop.eup %1415  ;;  %v277_v59 = vsel %vm220_vm0, %v1414_v54, 0.0  ;;  %v1884_v49 = vld [vmem:[#allocation7 + $0x28] sm:$0xff]  ;;  %v1887_v50 = vld [vmem:[#allocation7 + $0x20] sm:$0xff] }
 0x114   :  { %v279_v61 = vsel %vm220_vm0, %v1416_v57, 0.0 }
 0x115   :  { %v274_v55 = vadd.f32 %v273_v53, %v272_v52  ;;  %v1894_v52 = vld [vmem:[#allocation7 + $0x10] sm:$0xff]  ;;  %v1897_v53 = vld [vmem:[#allocation7 + $0x8] sm:$0xff] }
 0x117   :  { %v276_v58 = vadd.f32 %v275_v56, %v274_v55 }
 0x119   :  { %v278_v60 = vadd.f32 %v277_v59, %v276_v58 }
 0x11b   :  { %v280_v62 = vadd.f32 %v279_v61, %v278_v60 }
 0x11d   :  { %v281_v63 = vrot.slane %v280_v62, 4 }
 0x11f   :  { %v282_v16 = vadd.f32 %v281_v63, %v280_v62 }
 0x121   :  { %v283_v17 = vrot.slane %v282_v16, 2 }
 0x123   :  { %v284_v18 = vadd.f32 %v283_v17, %v282_v16  ;;  %v1927_v16 = vld [vmem:[#allocation2 + $0x40] sm:$0xff]  ;;  %v1942_v17 = vld [vmem:[#allocation2 + $0x68] sm:$0xff] }
 0x124   :  { %2618 = vst [vmem:[#allocation16_spill] sm:$0xff] %v1927_v16 }
 0x125   :  { %v285_v19 = vrot.slane %v284_v18, 1  ;;  %2623 = vst [vmem:[#allocation21_spill] sm:$0xff] %v1942_v17 }
 0x127   :  { %v286_v20 = vadd.f32 %v285_v19, %v284_v18  ;;  %v1945_v18 = vld [vmem:[#allocation2 + $0x70] sm:$0xff]  ;;  %v1948_v19 = vld [vmem:[#allocation2 + $0x78] sm:$0xff] }
 0x128   :  { %2624 = vst [vmem:[#allocation22_spill] sm:$0xff] %v1945_v18 }
 0x129   :  { %1417 = vrcp.f32 %v286_v20  ;;  %2625 = vst [vmem:[#allocation23_spill] sm:$0xff] %v1948_v19  ;;  %v1951_v20 = vld [vmem:[#allocation10 + $0x1] ss:$0 sm:$0xff] }
 0x12f   :  { %v1418_v21 = vpop.eup %1417 }
 0x130   :  { %v292_v22 = vmul.f32 %v1418_v21, %v1410_v48  ;;  %v290_v23 = vmul.f32 %v1418_v21, %v1406_v42  ;;  %v288_v24 = vmul.f32 %v1418_v21, %v1402_v30  ;;  %v293_v25 = vmul.f32 %v1418_v21, %v1412_v51  ;;  %v1860_v30 = vld [vmem:[#allocation7 + $0x68] sm:$0xff]  ;;  %v1863_v42 = vld [vmem:[#allocation7 + $0x60] sm:$0xff]  ;;  %v1882_v48 = vld [vmem:[#allocation7 + $0x30] sm:$0xff] }
 0x131   :  { %v291_v26 = vmul.f32 %v1418_v21, %v1408_v45  ;;  %v289_v27 = vmul.f32 %v1418_v21, %v1404_v39  ;;  %v295_v28 = vmul.f32 %v1418_v21, %v1416_v57  ;;  %v294_v29 = vmul.f32 %v1418_v21, %v1414_v54  ;;  %359 = vmatpush.msra.mxu1 %v1860_v30  ;;  %v1866_v39 = vld [vmem:[#allocation7 + $0x58] sm:$0xff]  ;;  %v1872_v45 = vld [vmem:[#allocation7 + $0x48] sm:$0xff]  ;;  %v1900_v54 = vld [vmem:[#allocation7] sm:$0xff] }
 0x132   :  { %318 = vperm.xlu2 %1400, %v292_v22   ;;  %308 = vperm.xlu1 %1399, %v290_v23   ;;  %v1890_v51 = vld [vmem:[#allocation7 + $0x18] sm:$0xff] }
 0x133   :  { %298 = vperm.xlu0 %1398, %v288_v24   ;;  %360 = vmatpush.msra.mxu1 %v1863_v42 }
 0x135   :  { %361 = vmatpush.msra.mxu1 %v1866_v39 }
 0x137   :  { %362 = vmatpush.msra.mxu1 %v1869_v43 }
 0x139   :  { %363 = vmatpush.msra.mxu1 %v1872_v45 }
 0x13a   :  { %323 = vperm.xlu2 %1400, %v293_v25   ;;  %313 = vperm.xlu1 %1399, %v291_v26  }
 0x13b   :  { %303 = vperm.xlu0 %1398, %v289_v27   ;;  %364 = vmatpush.msra.mxu1 %v1875_v46 }
 0x13d   :  { %365 = vmatpush.msra.mxu1 %v1878_v47 }
 0x13f   :  { %366 = vmatpush.msra.mxu1 %v1882_v48 }
 0x141   :  { %367 = vmatpush.msra.mxu1 %v1884_v49 }
 0x142   :  { %333 = vperm.xlu1 %1399, %v295_v28  }
 0x143   :  { %328 = vperm.xlu0 %1398, %v294_v29   ;;  %368 = vmatpush.msra.mxu1 %v1887_v50 }
 0x145   :  { %369 = vmatpush.msra.mxu1 %v1890_v51 }
 0x147   :  { %370 = vmatpush.msra.mxu1 %v1894_v52 }
 0x149   :  { %371 = vmatpush.msra.mxu1 %v1897_v53 }
 0x14b   :  { %372 = vmatpush.msra.mxu1 %v1900_v54 }
 0x14d   :  { %750 = vmatpush.msrb.mxu1 %v1749_v0 }
 0x14f   :  { %751 = vmatpush.msrb.mxu1 %v1751_v1 }
 0x151   :  { %752 = vmatpush.msrb.mxu1 %v1754_v2 }
 0x153   :  { %753 = vmatpush.msrb.mxu1 %v1757_v3 }
 0x155   :  { %754 = vmatpush.msrb.mxu1 %v1760_v4 }
 0x157   :  { %755 = vmatpush.msrb.mxu1 %v1763_v5 }
 0x159   :  { %756 = vmatpush.msrb.mxu1 %v1766_v6 }
 0x15b   :  { %757 = vmatpush.msrb.mxu1 %v1769_v7 }
 0x15d   :  { %758 = vmatpush.msrb.mxu1 %v1772_v8 }
 0x15f   :  { %759 = vmatpush.msrb.mxu1 %v1775_v9 }
 0x161   :  { %760 = vmatpush.msrb.mxu1 %v1778_v10 }
 0x163   :  { %761 = vmatpush.msrb.mxu1 %v1781_v11 }
 0x165   :  { %762 = vmatpush.msrb.mxu1 %v1784_v12 }
 0x167   :  { %763 = vmatpush.msrb.mxu1 %v1787_v13 }
 0x169   :  { %764 = vmatpush.msrb.mxu1 %v1790_v14 }
 0x16b   :  { %765 = vmatpush.msrb.mxu1 %v1793_v15  ;;  %v1930_v15 = vld [vmem:[#allocation2 + $0x48] sm:$0xff] }
 0x16c   :  { %2619 = vst [vmem:[#allocation17_spill] sm:$0xff] %v1930_v15 }
 0x18c   :  { %v319_v57 = vpop.permute.xlu2 %318 }
 0x18d   :  { %v340_v9 = vmul.f32 %v319_v57, %v1806_v34 }
 0x194   :  { %v324_v8 = vpop.permute.xlu2 %323 }
 0x1a4   :  { %v309_v55 = vpop.permute.xlu1 %308 }
 0x1a5   :  { %v299_v56 = vpop.permute.xlu0 %298  ;;  %v338_v4 = vmul.f32 %v309_v55, %v1815_v37 }
 0x1a6   :  { %v336_v2 = vmul.f32 %v299_v56, %v1812_v36 }
 0x1ac   :  { %v314_v0 = vpop.permute.xlu1 %313 }
 0x1ad   :  { %v304_v1 = vpop.permute.xlu0 %303  ;;  %v339_v6 = vmul.f32 %v314_v0, %v1818_v38 }
 0x1ae   :  { %v337_v3 = vmul.f32 %v304_v1, %v1803_v33  ;;  %v341_v33 = vmul.f32 %v324_v8, %v1800_v32  ;;  %v1933_v32 = vld [vmem:[#allocation2 + $0x50] sm:$0xff] }
 0x1af   :  { %2620 = vst [vmem:[#allocation18_spill] sm:$0xff] %v1933_v32 }
 0x1b0   :  { %v344_v5 = vadd.f32 %v337_v3, %v336_v2 }
 0x1b2   :  { %v345_v7 = vadd.f32 %v344_v5, %v338_v4 }
 0x1b4   :  { %v346_v10 = vadd.f32 %v345_v7, %v339_v6  ;;  %v334_v36 = vpop.permute.xlu1 %333 }
 0x1b5   :  { %v329_v11 = vpop.permute.xlu0 %328  ;;  %v343_v13 = vmul.f32 %v334_v36, %v1829_v44  ;;  %v1939_v44 = vld [vmem:[#allocation2 + $0x60] sm:$0xff] }
 0x1b6   :  { %v347_v12 = vadd.f32 %v346_v10, %v340_v9  ;;  %v342_v58 = vmul.f32 %v329_v11, %v1809_v35  ;;  %v1936_v35 = vld [vmem:[#allocation2 + $0x58] sm:$0xff]  ;;  %2622 = vst [vmem:[#allocation20_spill] sm:$0xff] %v1939_v44 }
 0x1b7   :  { %2621 = vst [vmem:[#allocation19_spill] sm:$0xff] %v1936_v35 }
 0x1b8   :  { %v348_v37 = vadd.f32 %v347_v12, %v341_v33 }
 0x1ba   :  { %v349_v38 = vadd.f32 %v348_v37, %v342_v58 }
 0x1bc   :  { %v350_v59 = vadd.f32 %v349_v38, %v343_v13 }
 0x1be   :  { %v351_v60 = vrot.slane %v350_v59, 4 }
 0x1c0   :  { %v352_v61 = vadd.f32 %v351_v60, %v350_v59 }
 0x1c2   :  { %v353_v14 = vrot.slane %v352_v61, 2 }
 0x1c4   :  { %v354_v62 = vadd.f32 %v353_v14, %v352_v61 }
 0x1c6   :  { %v355_v34 = vrot.slane %v354_v62, 1 }
 0x1c8   :  { %v356_v63 = vadd.f32 %v355_v34, %v354_v62 }
 0x1ca   :  { %373 = vmatmul.f32.vlgmr.msra.gmra.mxu1 %v356_v63 }
 0x1d2   :  { %766 = vmatmul.f32.vlgmr.msrb.gmra.mxu1 %v1927_v16  ;;  %v2158_v16 = vld [vmem:[#allocation8 + $0x8] sm:$0xff] }
 0x1da   :  { %769 = vmatmul.f32.gmra.mxu1 %v1930_v15  ;;  %v2144_v15 = vld [vmem:[#allocation8 + $0x10] sm:$0xff] }
 0x1e2   :  { %772 = vmatmul.f32.gmra.mxu1 %v1933_v32  ;;  %v2150_v32 = vld [vmem:[#allocation8 + $0x18] sm:$0xff] }
 0x1ea   :  { %775 = vmatmul.f32.gmra.mxu1 %v1936_v35 }
 0x1f2   :  { %778 = vmatmul.f32.gmra.mxu1 %v1939_v44  ;;  %v2137_v44 = vld [vmem:[#allocation8 + $0x38] sm:$0xff] }
 0x1fa   :  { %781 = vmatmul.f32.gmra.mxu1 %v1942_v17  ;;  %v2131_v17 = vld [vmem:[#allocation8 + $0x30] sm:$0xff] }
 0x202   :  { %784 = vmatmul.f32.gmra.mxu1 %v1945_v18 }
 0x20a   :  { %787 = vmatmul.f32.gmra.mxu1 %v1948_v19  ;;  %v2120_v19 = vld [vmem:[#allocation8 + $0x40] sm:$0xff] }
 0x247   :  { %v374_v21 = vpop.f32.mrf.mxu1 }
 0x248   :  { %v1954_v22 = vadd.f32 %v374_v21, %v1951_v20 }
 0x24a   :  { %v378_v23 = vsel %vm377_vm1, %v1954_v22, 0.0 }
 0x24b   :  { %379 = vadd.xlane.f32.xlu2 %v378_v23 }
 0x24f   :  { %v767_v24 = vpop.f32.mrf.mxu1 }
 0x250   :  { %v1971_v2 = vadd.f32 %v767_v24, %v1797_v31 }
 0x252   :  { %v791_v33 = vsel %vm220_vm0, %v1971_v2, -inf }
 0x257   :  { %v770_v25 = vpop.f32.mrf.mxu1 }
 0x258   :  { %v1962_v57 = vadd.f32 %v770_v25, %v1797_v31 }
 0x25a   :  { %v792_v7 = vsel %vm220_vm0, %v1962_v57, -inf }
 0x25f   :  { %v773_v26 = vpop.f32.mrf.mxu1 }
 0x260   :  { %v1974_v3 = vadd.f32 %v773_v26, %v1797_v31 }
 0x262   :  { %v793_v12 = vsel %vm220_vm0, %v1974_v3, -inf }
 0x267   :  { %v776_v27 = vpop.f32.mrf.mxu1 }
 0x268   :  { %v1977_v4 = vadd.f32 %v776_v27, %v1797_v31 }
 0x26a   :  { %v794_v36 = vsel %vm220_vm0, %v1977_v4, -inf }
 0x26f   :  { %v779_v28 = vpop.f32.mrf.mxu1 }
 0x270   :  { %v1965_v0 = vadd.f32 %v779_v28, %v1797_v31 }
 0x272   :  { %v795_v8 = vsel %vm220_vm0, %v1965_v0, -inf }
 0x273   :  { %v796_v58 = vmax.f32 %v791_v33, %v795_v8 }
 0x277   :  { %v782_v29 = vpop.f32.mrf.mxu1 }
 0x278   :  { %v1959_v56 = vadd.f32 %v782_v29, %v1797_v31 }
 0x27a   :  { %v797_v5 = vsel %vm220_vm0, %v1959_v56, -inf }
 0x27b   :  { %v798_v11 = vmax.f32 %v792_v7, %v797_v5 }
 0x27d   :  { %v803_v59 = vmax.f32 %v796_v58, %v798_v11 }
 0x27f   :  { %v785_v55 = vpop.f32.mrf.mxu1 }
 0x280   :  { %v1968_v1 = vadd.f32 %v785_v55, %v1797_v31 }
 0x282   :  { %v799_v9 = vsel %vm220_vm0, %v1968_v1, -inf }
 0x283   :  { %v800_v13 = vmax.f32 %v793_v12, %v799_v9 }
 0x287   :  { %v788_v6 = vpop.f32.mrf.mxu1 }
 0x288   :  { %v1988_v10 = vadd.f32 %v788_v6, %v1797_v31 }
 0x28a   :  { %v801_v37 = vsel %vm220_vm0, %v1988_v10, -inf }
 0x28b   :  { %v802_v38 = vmax.f32 %v794_v36, %v801_v37 }
 0x28d   :  { %v804_v60 = vmax.f32 %v800_v13, %v802_v38 }
 0x28f   :  { %v805_v31 = vmax.f32 %v803_v59, %v804_v60 }
 0x291   :  { %v806_v61 = vrot.slane %v805_v31, 4 }
 0x293   :  { %v807_v14 = vmax.f32 %v805_v31, %v806_v61 }
 0x295   :  { %v808_v62 = vrot.slane %v807_v14, 2 }
 0x297   :  { %v809_v34 = vmax.f32 %v807_v14, %v808_v62 }
 0x299   :  { %v810_v63 = vrot.slane %v809_v34, 1 }
 0x29b   :  { %v811_v21 = vmax.f32 %v809_v34, %v810_v63 }
 0x29d   :  { %v812_v23 = vsub.f32 %v1971_v2, %v811_v21  ;;  %v813_v24 = vsub.f32 %v1962_v57, %v811_v21  ;;  %v814_v25 = vsub.f32 %v1974_v3, %v811_v21  ;;  %v815_v26 = vsub.f32 %v1977_v4, %v811_v21 }
 0x29e   :  { %v816_v27 = vsub.f32 %v1965_v0, %v811_v21  ;;  %v817_v5 = vsub.f32 %v1959_v56, %v811_v21  ;;  %v818_v7 = vsub.f32 %v1968_v1, %v811_v21  ;;  %v819_v9 = vsub.f32 %v1988_v10, %v811_v21 }
 0x29f   :  { %v820_v28 = vmul.f32 1.442695, %v812_v23  ;;  %v822_v29 = vmul.f32 1.442695, %v813_v24  ;;  %v824_v55 = vmul.f32 1.442695, %v814_v25 }
 0x2a0   :  { %v826_v6 = vmul.f32 1.442695, %v815_v26  ;;  %v828_v8 = vmul.f32 1.442695, %v816_v27  ;;  %v830_v11 = vmul.f32 1.442695, %v817_v5 }
 0x2a1   :  { %1419 = vpow2.f32 %v820_v28  ;;  %v832_v33 = vmul.f32 1.442695, %v818_v7  ;;  %v834_v37 = vmul.f32 1.442695, %v819_v9 }
 0x2a2   :  { %1421 = vpow2.f32 %v822_v29 }
 0x2a3   :  { %1423 = vpow2.f32 %v824_v55 }
 0x2a4   :  { %1425 = vpow2.f32 %v826_v6  ;;  %v167_v6 = vlaneseq }
 0x2a5   :  { %1427 = vpow2.f32 %v828_v8 }
 0x2a6   :  { %1429 = vpow2.f32 %v830_v11  ;;  %v2014_v9 = vand.u32 127, %v167_v6  ;;  %v2025_v6 = vld [vmem:[#allocation8 + $0xf0] sm:$0xff] }
 0x2a7   :  { %v1420_v12 = vpop.eup %1419  ;;  %1431 = vpow2.f32 %v832_v33  ;;  %436 = vmatpush.msrb.mxu0 %v2025_v6  ;;  %1338 = vmatpush.msra.mxu2 %v2025_v6 }
 0x2a8   :  { %v1422_v36 = vpop.eup %1421  ;;  %v836_v58 = vsel %vm220_vm0, %v1420_v12, 0.0  ;;  %1433 = vpow2.f32 %v834_v37  ;;  %vm169_vm2 = vcmp.lt.s32.totalorder %v2014_v9, 64  ;;  %vm170_vm11 = vcmp.lt.s32.totalorder %v2014_v9, 32 }
 0x2a9   :  { %v1424_v13 = vpop.eup %1423  ;;  %v837_v38 = vsel %vm220_vm0, %v1422_v36, 0.0 }
 0x2aa   :  { %v1426_v59 = vpop.eup %1425  ;;  %v838_v60 = vadd.f32 %v837_v38, %v836_v58  ;;  %v839_v31 = vsel %vm220_vm0, %v1424_v13, 0.0 }
 0x2ab   :  { %v1428_v61 = vpop.eup %1427  ;;  %v841_v62 = vsel %vm220_vm0, %v1426_v59, 0.0 }
 0x2ac   :  { %v840_v14 = vadd.f32 %v839_v31, %v838_v60  ;;  %v1430_v34 = vpop.eup %1429  ;;  %v843_v21 = vsel %vm220_vm0, %v1428_v61, 0.0 }
 0x2ad   :  { %v1432_v23 = vpop.eup %1431  ;;  %v845_v25 = vsel %vm220_vm0, %v1430_v34, 0.0 }
 0x2ae   :  { %v842_v63 = vadd.f32 %v841_v62, %v840_v14  ;;  %v1434_v26 = vpop.eup %1433  ;;  %v847_v28 = vsel %vm220_vm0, %v1432_v23, 0.0 }
 0x2af   :  { %v849_v55 = vsel %vm220_vm0, %v1434_v26, 0.0 }
 0x2b0   :  { %v844_v24 = vadd.f32 %v843_v21, %v842_v63 }
 0x2b2   :  { %v846_v27 = vadd.f32 %v845_v25, %v844_v24 }
 0x2b4   :  { %v848_v29 = vadd.f32 %v847_v28, %v846_v27 }
 0x2b6   :  { %v850_v5 = vadd.f32 %v849_v55, %v848_v29 }
 0x2b8   :  { %v851_v7 = vrot.slane %v850_v5, 4 }
 0x2ba   :  { %v852_v8 = vadd.f32 %v851_v7, %v850_v5  ;;  %v2029_v7 = vld [vmem:[#allocation8 + $0xf8] sm:$0xff] }
 0x2bb   :  { %477 = vmatpush.msra.mxu3 %v2029_v7  ;;  %1041 = vmatpush.msra.mxu1 %v2029_v7 }
 0x2bc   :  { %v853_v11 = vrot.slane %v852_v8, 2 }
 0x2be   :  { %v380_v33 = vpop.xlane.xlu2 %379  ;;  %v854_v58 = vadd.f32 %v853_v11, %v852_v8  ;;  %v2049_v8 = vld [vmem:[#allocation8 + $0xc0] sm:$0xff]  ;;  %v2052_v11 = vld [vmem:[#allocation8 + $0xc8] sm:$0xff] }
 0x2bf   :  { %v381_v37 = vmul.f32 0.015625, %v380_v33 }
 0x2c0   :  { %v855_v60 = vrot.slane %v854_v58, 1 }
 0x2c1   :  { %v382_v38 = vsub.f32 %v1954_v22, %v381_v37 }
 0x2c2   :  { %v856_v14 = vadd.f32 %v855_v60, %v854_v58  ;;  %v2057_v58 = vld [vmem:[#allocation8 + $0xb0] sm:$0xff] }
 0x2c3   :  { %v2020_v31 = vsel %vm169_vm2, %v382_v38, 0.0  ;;  %v2060_v38 = vld [vmem:[#allocation8 + $0xb8] sm:$0xff] }
 0x2c4   :  { %v384_v62 = vmul.f32 %v2020_v31, %v2020_v31  ;;  %1435 = vrcp.f32 %v856_v14  ;;  %v2065_v14 = vld [vmem:[#allocation8 + $0xa0] sm:$0xff] }
 0x2c6   :  { %v385_v63 = vsel %vm377_vm1, %v384_v62, 0.0  ;;  %v2068_v62 = vld [vmem:[#allocation8 + $0xa8] sm:$0xff] }
 0x2c7   :  { %386 = vadd.xlane.f32.xlu0 %v385_v63 }
 0x2ca   :  { %v1436_v21 = vpop.eup %1435 }
 0x2cb   :  { %v858_v24 = vmul.f32 %v1436_v21, %v1420_v12  ;;  %v863_v25 = vmul.f32 %v1436_v21, %v1430_v34  ;;  %v859_v27 = vmul.f32 %v1436_v21, %v1422_v36  ;;  %v865_v22 = vmul.f32 %v1436_v21, %v1434_v26  ;;  %v2044_v26 = vld [vmem:[#allocation8 + $0xd8] sm:$0xff] }
 0x2cc   :  { %v860_v28 = vmul.f32 %v1436_v21, %v1424_v13  ;;  %v861_v29 = vmul.f32 %v1436_v21, %v1426_v59  ;;  %v862_v55 = vmul.f32 %v1436_v21, %v1428_v61  ;;  %v864_v5 = vmul.f32 %v1436_v21, %v1432_v23  ;;  %v2033_v13 = vld [vmem:[#allocation8 + $0xe0] sm:$0xff]  ;;  %v2037_v61 = vld [vmem:[#allocation8 + $0xe8] sm:$0xff]  ;;  %v2041_v23 = vld [vmem:[#allocation8 + $0xd0] sm:$0xff] }
 0x2cd   :  { %868 = vperm.xlu1 %1399, %v858_v24   ;;  %893 = vperm.xlu2 %1400, %v863_v25   ;;  %v2075_v24 = vld [vmem:[#allocation8 + $0x90] sm:$0xff]  ;;  %v2078_v25 = vld [vmem:[#allocation8 + $0x98] sm:$0xff] }
 0x2ce   :  { %437 = vmatpush.msrb.mxu0 %v2033_v13  ;;  %1339 = vmatpush.msra.mxu2 %v2033_v13 }
 0x2cf   :  { %478 = vmatpush.msra.mxu3 %v2037_v61  ;;  %1042 = vmatpush.msra.mxu1 %v2037_v61 }
 0x2d0   :  { %438 = vmatpush.msrb.mxu0 %v2041_v23  ;;  %1340 = vmatpush.msra.mxu2 %v2041_v23 }
 0x2d1   :  { %479 = vmatpush.msra.mxu3 %v2044_v26  ;;  %1043 = vmatpush.msra.mxu1 %v2044_v26 }
 0x2d2   :  { %439 = vmatpush.msrb.mxu0 %v2049_v8  ;;  %1341 = vmatpush.msra.mxu2 %v2049_v8 }
 0x2d3   :  { %480 = vmatpush.msra.mxu3 %v2052_v11  ;;  %1044 = vmatpush.msra.mxu1 %v2052_v11 }
 0x2d4   :  { %440 = vmatpush.msrb.mxu0 %v2057_v58  ;;  %1342 = vmatpush.msra.mxu2 %v2057_v58 }
 0x2d5   :  { %873 = vperm.xlu1 %1399, %v859_v27   ;;  %481 = vmatpush.msra.mxu3 %v2060_v38 }
 0x2d6   :  { %1045 = vmatpush.msra.mxu1 %v2060_v38  ;;  %441 = vmatpush.msrb.mxu0 %v2065_v14 }
 0x2d7   :  { %1343 = vmatpush.msra.mxu2 %v2065_v14  ;;  %482 = vmatpush.msra.mxu3 %v2068_v62 }
 0x2d8   :  { %1046 = vmatpush.msra.mxu1 %v2068_v62  ;;  %442 = vmatpush.msrb.mxu0 %v2075_v24 }
 0x2d9   :  { %1344 = vmatpush.msra.mxu2 %v2075_v24  ;;  %483 = vmatpush.msra.mxu3 %v2078_v25 }
 0x2da   :  { %1047 = vmatpush.msra.mxu1 %v2078_v25 }
 0x2db   :  { %903 = vperm.xlu0 %1398, %v865_v22   ;;  %v2083_v22 = vld [vmem:[#allocation8 + $0x80] sm:$0xff] }
 0x2dc   :  { %443 = vmatpush.msrb.mxu0 %v2083_v22  ;;  %1345 = vmatpush.msra.mxu2 %v2083_v22 }
 0x2dd   :  { %878 = vperm.xlu1 %1399, %v860_v28   ;;  %v2086_v28 = vld [vmem:[#allocation8 + $0x88] sm:$0xff] }
 0x2de   :  { %484 = vmatpush.msra.mxu3 %v2086_v28  ;;  %1048 = vmatpush.msra.mxu1 %v2086_v28 }
 0x2e5   :  { %883 = vperm.xlu1 %1399, %v861_v29  }
 0x2ed   :  { %888 = vperm.xlu1 %1399, %v862_v55   ;;  %v2091_v55 = vld [vmem:[#allocation8 + $0x70] sm:$0xff] }
 0x2ee   :  { %444 = vmatpush.msrb.mxu0 %v2091_v55  ;;  %1346 = vmatpush.msra.mxu2 %v2091_v55 }
 0x2f5   :  { %898 = vperm.xlu1 %1399, %v864_v5   ;;  %v2094_v5 = vld [vmem:[#allocation8 + $0x78] sm:$0xff] }
 0x2f6   :  { %485 = vmatpush.msra.mxu3 %v2094_v5  ;;  %1049 = vmatpush.msra.mxu1 %v2094_v5 }
 0x33a   :  { %v387_v12 = vpop.xlane.xlu0 %386 }
 0x33b   :  { %v388_v34 = vmul.f32 0.015625, %v387_v12  ;;  %v2099_v12 = vld [vmem:[#allocation10 + $0x2] ss:$0 sm:$0xff] }
 0x33c   :  { %2626 = vst [vmem:[#allocation24_spill] sm:$0xff] %v2099_v12 }
 0x33d   :  { %v389_v36 = vadd.f32 1e-05, %v388_v34 }
 0x33f   :  { %1437 = vrsqrt.f32 %v389_v36  ;;  %v2035_v59 = vpop.permute.xlu1 %868  ;;  %vm396_vm4 = vweird.f32 %v389_v36 }
 0x345   :  { %v1438_v33 = vpop.eup %1437 }
 0x346   :  { %v391_v37 = vmul.f32 %v1438_v33, %v389_v36  ;;  %vm397_vm3 = vweird.f32 %v1438_v33  ;;  %v2104_v36 = vld [vmem:[#allocation8 + $0x68] sm:$0xff] }
 0x347   :  { %v2073_v21 = vpop.permute.xlu1 %873  ;;  %vm398_vm5 = vmor %vm396_vm4, %vm397_vm3  ;;  %486 = vmatpush.msra.mxu3 %v2104_v36  ;;  %1050 = vmatpush.msra.mxu1 %v2104_v36 }
 0x348   :  { %v392_v60 = vmul.f32 %v1438_v33, %v391_v37  ;;  %v2101_v37 = vld [vmem:[#allocation8 + $0x60] sm:$0xff] }
 0x349   :  { %445 = vmatpush.msrb.mxu0 %v2101_v37  ;;  %1347 = vmatpush.msra.mxu2 %v2101_v37 }
 0x34a   :  { %v393_v63 = vmul.f32 0.5, %v392_v60 }
 0x34c   :  { %v394_v27 = vsub.f32 1.5, %v393_v63  ;;  %v2110_v63 = vld [vmem:[#allocation10 + $0x3] ss:$0 sm:$0xff] }
 0x34d   :  { %2627 = vst [vmem:[#allocation25_spill] sm:$0xff] %v2110_v63 }
 0x34e   :  { %v395_v29 = vmul.f32 %v1438_v33, %v394_v27  ;;  %v2112_v27 = vld [vmem:[#allocation8 + $0x50] sm:$0xff] }
 0x34f   :  { %446 = vmatpush.msrb.mxu0 %v2112_v27  ;;  %1348 = vmatpush.msra.mxu2 %v2112_v27 }
 0x350   :  { %v399_v34 = vsel %vm398_vm5, %v1438_v33, %v395_v29  ;;  %v2115_v33 = vld [vmem:[#allocation8 + $0x58] sm:$0xff] }
 0x351   :  { %v400_v60 = vmul.f32 %v399_v34, %v2020_v31  ;;  %v2123_v31 = vpop.permute.xlu1 %878  ;;  %487 = vmatpush.msra.mxu3 %v2115_v33  ;;  %v2126_v34 = vld [vmem:[#allocation8 + $0x48] sm:$0xff]  ;;  %1051 = vmatpush.msra.mxu1 %v2115_v33 }
 0x352   :  { %447 = vmatpush.msrb.mxu0 %v2120_v19  ;;  %1349 = vmatpush.msra.mxu2 %v2120_v19 }
 0x353   :  { %v401_v29 = vmul.f32 %v400_v60, %v2099_v12  ;;  %v2134_v60 = vld [vmem:[#allocation8 + $0x20] sm:$0xff]  ;;  %488 = vmatpush.msra.mxu3 %v2126_v34  ;;  %1052 = vmatpush.msra.mxu1 %v2126_v34 }
 0x354   :  { %448 = vmatpush.msrb.mxu0 %v2131_v17  ;;  %1350 = vmatpush.msra.mxu2 %v2131_v17 }
 0x355   :  { %v402_v18 = vadd.f32 %v401_v29, %v2110_v63  ;;  %v2142_v29 = vld [vmem:[#allocation8 + $0x28] sm:$0xff]  ;;  %489 = vmatpush.msra.mxu3 %v2137_v44  ;;  %1053 = vmatpush.msra.mxu1 %v2137_v44 }
 0x356   :  { %449 = vmatpush.msrb.mxu0 %v2134_v60  ;;  %1351 = vmatpush.msra.mxu2 %v2134_v60 }
 0x357   :  { %v1320_v35 = vmul.f32 -1.442695, %v402_v18  ;;  %490 = vmatpush.msra.mxu3 %v2142_v29  ;;  %v2153_v18 = vld [vmem:[#allocation8] sm:$0xff]  ;;  %1054 = vmatpush.msra.mxu1 %v2142_v29 }
 0x358   :  { %450 = vmatpush.msrb.mxu0 %v2144_v15  ;;  %1352 = vmatpush.msra.mxu2 %v2144_v15 }
 0x359   :  { %1439 = vpow2.f32 %v1320_v35  ;;  %491 = vmatpush.msra.mxu3 %v2150_v32  ;;  %1055 = vmatpush.msra.mxu1 %v2150_v32  ;;  %v884_v35 = vpop.permute.xlu1 %883 }
 0x35a   :  { %451 = vmatpush.msrb.mxu0 %v2153_v18  ;;  %1353 = vmatpush.msra.mxu2 %v2153_v18 }
 0x35b   :  { %492 = vmatpush.msra.mxu3 %v2158_v16  ;;  %1056 = vmatpush.msra.mxu1 %v2158_v16 }
 0x35c   :  { %927 = vmatpush.msra.mxu0 %v1855_v40  ;;  %1000 = vmatpush.msrb.mxu2 %v2025_v6 }
 0x35d   :  { %1355 = vmatpush.msrb.mxu3 %v2029_v7 }
 0x35e   :  { %928 = vmatpush.msra.mxu0 %v1858_v41  ;;  %1001 = vmatpush.msrb.mxu2 %v2033_v13  ;;  %v907_v41 = vmul.f32 %v2073_v21, %v1962_v57  ;;  %v908_v13 = vmul.f32 %v2123_v31, %v1974_v3 }
 0x35f   :  { %v1440_v63 = vpop.eup %1439  ;;  %1357 = vmatpush.msrb.mxu3 %v2037_v61 }
 0x360   :  { %v406_v12 = vadd.f32 1.0, %v1440_v63  ;;  %929 = vmatpush.msra.mxu0 %v1860_v30  ;;  %1002 = vmatpush.msrb.mxu2 %v2041_v23 }
 0x361   :  { %1359 = vmatpush.msrb.mxu3 %v2044_v26  ;;  %v889_v30 = vpop.permute.xlu1 %888 }
 0x362   :  { %1441 = vrcp.f32 %v406_v12  ;;  %930 = vmatpush.msra.mxu0 %v1863_v42  ;;  %1003 = vmatpush.msrb.mxu2 %v2049_v8  ;;  %v906_v42 = vmul.f32 %v2035_v59, %v1971_v2  ;;  %v418_v57 = vand.u32 2147483648, %v406_v12  ;;  %v416_v8 = vand.u32 2147483647, %v406_v12 }
 0x363   :  { %1361 = vmatpush.msrb.mxu3 %v2052_v11  ;;  %vm412_vm7 = vweird.f32 %v406_v12  ;;  %v910_v3 = vmul.f32 %v889_v30, %v1965_v0  ;;  %v2283_v30 = vld [vmem:[#allocation10 + $0x4] ss:$8 sm:$0x3] }
 0x364   :  { %931 = vmatpush.msra.mxu0 %v1866_v39  ;;  %1004 = vmatpush.msrb.mxu2 %v2057_v58  ;;  %v909_v58 = vmul.f32 %v884_v35, %v1977_v4  ;;  %vm417_vm9 = vcmp.eq.f32.partialorder %v416_v8, 8.507059e+37 }
 0x365   :  { %1363 = vmatpush.msrb.mxu3 %v2060_v38 }
 0x366   :  { %932 = vmatpush.msra.mxu0 %v1869_v43  ;;  %1005 = vmatpush.msrb.mxu2 %v2065_v14  ;;  %v914_v43 = vadd.f32 %v907_v41, %v906_v42  ;;  %v2286_v42 = vperm.slane %v2283_v30, 1 }
 0x367   :  { %1365 = vmatpush.msrb.mxu3 %v2068_v62 }
 0x368   :  { %v1442_v40 = vpop.eup %1441  ;;  %933 = vmatpush.msra.mxu0 %v1872_v45  ;;  %1006 = vmatpush.msrb.mxu2 %v2075_v24  ;;  %v915_v2 = vadd.f32 %v914_v43, %v908_v13  ;;  %v1693_v43 = vmov 64.0  }
 0x369   :  { %v408_v6 = vmul.f32 %v1442_v40, %v406_v12  ;;  %1367 = vmatpush.msrb.mxu3 %v2078_v25  ;;  %vm413_vm6 = vweird.f32 %v1442_v40  ;;  %v899_v21 = vpop.permute.xlu1 %898  ;;  %1443 = vrcp.f32 %v1693_v43 }
 0x36a   :  { %934 = vmatpush.msra.mxu0 %v1875_v46  ;;  %1007 = vmatpush.msrb.mxu2 %v2083_v22  ;;  %vm414_vm8 = vmor %vm412_vm7, %vm413_vm6  ;;  %v419_v46 = vor.u32 1.1754944e-38, %v418_v57  ;;  %v916_v59 = vadd.f32 %v915_v2, %v909_v58  ;;  %v912_v22 = vmul.f32 %v899_v21, %v1968_v1  ;;  %v1525_v1 = vld [vmem:[#allocation2 + $0x8] sm:$0xff] }
 0x36b   :  { %v409_v39 = vsub.f32 1.0, %v408_v6  ;;  %1369 = vmatpush.msrb.mxu3 %v2086_v28 }
 0x36c   :  { %935 = vmatpush.msra.mxu0 %v1878_v47  ;;  %1008 = vmatpush.msrb.mxu2 %v2091_v55  ;;  %v894_v47 = vpop.permute.xlu2 %893  ;;  %v917_v24 = vadd.f32 %v916_v59, %v910_v3  ;;  %v1523_v55 = vld [vmem:[#allocation2] sm:$0xff] }
 0x36d   :  { %v410_v23 = vmul.f32 %v1442_v40, %v409_v39  ;;  %1371 = vmatpush.msrb.mxu3 %v2094_v5 }
 0x36e   :  { %936 = vmatpush.msra.mxu0 %v1882_v48  ;;  %1009 = vmatpush.msrb.mxu2 %v2101_v37  ;;  %v911_v48 = vmul.f32 %v894_v47, %v1959_v56  ;;  %v1524_v37 = vld [vmem:[#allocation2 + $0x20] sm:$0xff] }
 0x36f   :  { %v411_v45 = vadd.f32 %v1442_v40, %v410_v23  ;;  %1373 = vmatpush.msrb.mxu3 %v2104_v36  ;;  %v1444_v2 = vpop.eup %1443 }
 0x370   :  { %937 = vmatpush.msra.mxu0 %v1884_v49  ;;  %1010 = vmatpush.msrb.mxu2 %v2112_v27  ;;  %v918_v49 = vadd.f32 %v917_v24, %v911_v48  ;;  %v532_v47 = vmul.f32 64.0, %v1444_v2  ;;  %vm536_vm10 = vweird.f32 %v1444_v2 }
 0x371   :  { %v415_v4 = vsel %vm414_vm8, %v1442_v40, %v411_v45  ;;  %1375 = vmatpush.msrb.mxu3 %v2115_v33  ;;  %v1530_v40 = vld [vmem:[#allocation2 + $0x38] sm:$0xff] }
 0x372   :  { %v420_v14 = vsel %vm417_vm9, %v419_v46, %v415_v4  ;;  %938 = vmatpush.msra.mxu0 %v1887_v50  ;;  %1011 = vmatpush.msrb.mxu2 %v2120_v19  ;;  %v904_v50 = vpop.permute.xlu0 %903  ;;  %v919_v56 = vadd.f32 %v918_v49, %v912_v22  ;;  %v533_v48 = vsub.f32 1.0, %v532_v47 }
 0x373   :  { %v422_v0 = vperm.slane %v420_v14, 0  ;;  %1377 = vmatpush.msrb.mxu3 %v2126_v34  ;;  %v913_v19 = vmul.f32 %v904_v50, %v1988_v10  ;;  %v1528_v10 = vld [vmem:[#allocation2 + $0x30] sm:$0xff] }
 0x374   :  { %939 = vmatpush.msra.mxu0 %v1890_v51  ;;  %1012 = vmatpush.msrb.mxu2 %v2131_v17  ;;  %v1527_v17 = vld [vmem:[#allocation2 + $0x10] sm:$0xff] }
 0x375   :  { %v2210_v12 = vmul.f32 %v1523_v55, %v422_v0  ;;  %v2212_v63 = vmul.f32 %v1524_v37, %v422_v0  ;;  %1379 = vmatpush.msrb.mxu3 %v2137_v44  ;;  %v920_v51 = vadd.f32 %v919_v56, %v913_v19  ;;  %v2227_v27 = vmul.f32 %v1525_v1, %v422_v0 }
 0x376   :  { %940 = vmatpush.msra.mxu0 %v1894_v52  ;;  %1013 = vmatpush.msrb.mxu2 %v2134_v60  ;;  %v1526_v52 = vld [vmem:[#allocation2 + $0x28] sm:$0xff]  ;;  %v2243_v60 = vmul.f32 %v1528_v10, %v422_v0  ;;  %v2254_v41 = vmul.f32 %v1530_v40, %v422_v0  ;;  %v534_v37 = vmul.f32 %v1444_v2, %v533_v48 }
 0x377   :  { %452 = vmatmul.f32.vlgmr.msrb.gmra.mxu0 %v2210_v12  ;;  %464 = vmatmul.f32.vlgmr.msra.gmra.mxu2 %v2212_v63  ;;  %v2229_v31 = vmul.f32 %v1526_v52, %v422_v0 }
 0x378   :  { %493 = vmatmul.f32.vlgmr.msra.gmra.mxu3 %v2210_v12  ;;  %941 = vmatpush.msra.mxu0 %v1897_v53  ;;  %v921_v53 = vrot.slane %v920_v51, 4  ;;  %v535_v56 = vadd.f32 %v1444_v2, %v534_v37  ;;  %v2632_v37 = vld [vmem:[#allocation17_spill] sm:$0xff] }
 0x379   :  { %1381 = vmatpush.msrb.mxu3 %v2142_v29  ;;  %1014 = vmatpush.msrb.mxu2 %v2144_v15  ;;  %v2241_v15 = vmul.f32 %v1527_v17, %v422_v0 }
 0x37a   :  { %942 = vmatpush.msra.mxu0 %v1900_v54  ;;  %v922_v54 = vadd.f32 %v921_v53, %v920_v51  ;;  %v2296_v1 = vsel %vm536_vm10, %v1444_v2, %v535_v56 }
 0x37b   :  { %1015 = vmatpush.msrb.mxu2 %v2153_v18  ;;  %1383 = vmatpush.msrb.mxu3 %v2150_v32  ;;  %v1529_v18 = vld [vmem:[#allocation2 + $0x18] sm:$0xff] }
 0x37c   :  { %v2252_v35 = vmul.f32 %v1529_v18, %v422_v0 }
 0x37d   :  { %1354 = vmatpush.msra.mxu2 %v2029_v7  ;;  %1385 = vmatpush.msrb.mxu3 %v2158_v16  ;;  %v923_v7 = vrot.slane %v922_v54, 2 }
 0x37f   :  { %455 = vmatmul.f32.gmra.mxu0 %v2227_v27  ;;  %467 = vmatmul.f32.gmra.mxu2 %v2229_v31 }
 0x380   :  { %496 = vmatmul.f32.gmra.mxu3 %v2227_v27  ;;  %1356 = vmatpush.msra.mxu2 %v2037_v61  ;;  %v924_v61 = vadd.f32 %v923_v7, %v922_v54 }
 0x382   :  { %1358 = vmatpush.msra.mxu2 %v2044_v26  ;;  %v925_v26 = vrot.slane %v924_v61, 1 }
 0x384   :  { %1360 = vmatpush.msra.mxu2 %v2052_v11  ;;  %v926_v11 = vadd.f32 %v925_v26, %v924_v61 }
 0x386   :  { %1362 = vmatpush.msra.mxu2 %v2060_v38 }
 0x387   :  { %458 = vmatmul.f32.gmra.mxu0 %v2241_v15  ;;  %470 = vmatmul.f32.gmra.mxu2 %v2243_v60 }
 0x388   :  { %499 = vmatmul.f32.gmra.mxu3 %v2241_v15  ;;  %1364 = vmatpush.msra.mxu2 %v2068_v62 }
 0x38a   :  { %1366 = vmatpush.msra.mxu2 %v2078_v25 }
 0x38c   :  { %1368 = vmatpush.msra.mxu2 %v2086_v28 }
 0x38e   :  { %1370 = vmatpush.msra.mxu2 %v2094_v5 }
 0x38f   :  { %461 = vmatmul.f32.gmra.mxu0 %v2252_v35  ;;  %473 = vmatmul.f32.gmra.mxu2 %v2254_v41 }
 0x390   :  { %502 = vmatmul.f32.gmra.mxu3 %v2252_v35  ;;  %1372 = vmatpush.msra.mxu2 %v2104_v36 }
 0x392   :  { %1374 = vmatpush.msra.mxu2 %v2115_v33 }
 0x394   :  { %1376 = vmatpush.msra.mxu2 %v2126_v34 }
 0x396   :  { %1378 = vmatpush.msra.mxu2 %v2137_v44 }
 0x397   :  { %943 = vmatmul.f32.vlgmr.msra.gmra.mxu0 %v926_v11 }
 0x398   :  { %505 = vmatmul.f32.gmra.mxu3 %v2212_v63  ;;  %1380 = vmatpush.msra.mxu2 %v2142_v29 }
 0x39a   :  { %1382 = vmatpush.msra.mxu2 %v2150_v32 }
 0x39c   :  { %1384 = vmatpush.msra.mxu2 %v2158_v16 }
 0x3a0   :  { %508 = vmatmul.f32.gmra.mxu3 %v2229_v31 }
 0x3a8   :  { %511 = vmatmul.f32.gmra.mxu3 %v2243_v60 }
 0x3b0   :  { %514 = vmatmul.f32.gmra.mxu3 %v2254_v41 }
 0x3f4   :  { %v2273_v38 = vpop.f32.mrf.mxu0 }
 0x3fb   :  { %v494_v62 = vpop.f32.mrf.mxu3 }
 0x3fc   :  { %v2275_v25 = vpop.f32.mrf.mxu0  ;;  %v495_v13 = vadd.f32 %v494_v62, %v2286_v42 }
 0x403   :  { %v497_v28 = vpop.f32.mrf.mxu3 }
 0x404   :  { %v2277_v5 = vpop.f32.mrf.mxu0  ;;  %v498_v39 = vadd.f32 %v497_v28, %v2286_v42 }
 0x406   :  { %v518_v23 = vadd.f32 %v498_v39, %v495_v13  ;;  %v2628_v39 = vld [vmem:[#allocation24_spill] sm:$0xff] }
 0x40b   :  { %v500_v44 = vpop.f32.mrf.mxu3 }
 0x40c   :  { %v2279_v36 = vpop.f32.mrf.mxu0  ;;  %v501_v57 = vadd.f32 %v500_v44, %v2286_v42 }
 0x40e   :  { %v519_v58 = vadd.f32 %v518_v23, %v501_v57  ;;  %v2629_v57 = vld [vmem:[#allocation25_spill] sm:$0xff] }
 0x413   :  { %v503_v32 = vpop.f32.mrf.mxu3 }
 0x414   :  { %v944_v33 = vpop.f32.mrf.mxu0 }
 0x415   :  { %v945_v34 = vadd.f32 %v944_v33, %v1951_v20  ;;  %v504_v20 = vadd.f32 %v503_v32, %v2286_v42 }
 0x417   :  { %v947_v16 = vsel %vm377_vm1, %v945_v34, 0.0  ;;  %v520_v3 = vadd.f32 %v519_v58, %v504_v20 }
 0x418   :  { %948 = vadd.xlane.f32.xlu1 %v947_v16 }
 0x41b   :  { %v506_v29 = vpop.f32.mrf.mxu3 }
 0x41c   :  { %v507_v45 = vadd.f32 %v506_v29, %v2286_v42 }
 0x41e   :  { %v521_v4 = vadd.f32 %v520_v3, %v507_v45 }
 0x423   :  { %v509_v6 = vpop.f32.mrf.mxu3 }
 0x424   :  { %v510_v46 = vadd.f32 %v509_v6, %v2286_v42 }
 0x426   :  { %v522_v14 = vadd.f32 %v521_v4, %v510_v46 }
 0x42b   :  { %v512_v8 = vpop.f32.mrf.mxu3 }
 0x42c   :  { %v513_v59 = vadd.f32 %v512_v8, %v2286_v42 }
 0x42e   :  { %v523_v0 = vadd.f32 %v522_v14, %v513_v59 }
 0x433   :  { %v515_v21 = vpop.f32.mrf.mxu3 }
 0x434   :  { %v516_v24 = vadd.f32 %v515_v21, %v2286_v42 }
 0x436   :  { %v524_v22 = vadd.f32 %v523_v0, %v516_v24  ;;  %v2630_v24 = vld [vmem:[#allocation16_spill] sm:$0xff] }
 0x438   :  { %v525_v55 = vrot.slane %v524_v22, 4 }
 0x43a   :  { %v526_v49 = vadd.f32 %v525_v55, %v524_v22  ;;  %v2631_v22 = vld [vmem:[#allocation18_spill] sm:$0xff] }
 0x43c   :  { %v527_v50 = vrot.slane %v526_v49, 2 }
 0x43e   :  { %v528_v19 = vadd.f32 %v527_v50, %v526_v49  ;;  %v2633_v50 = vld [vmem:[#allocation19_spill] sm:$0xff] }
 0x440   :  { %v529_v51 = vrot.slane %v528_v19, 1 }
 0x442   :  { %v530_v52 = vadd.f32 %v529_v51, %v528_v19  ;;  %v2634_v19 = vld [vmem:[#allocation20_spill] sm:$0xff] }
 0x444   :  { %v538_v53 = vmul.f32 %v2296_v1, %v530_v52  ;;  %v2635_v52 = vld [vmem:[#allocation21_spill] sm:$0xff] }
 0x446   :  { %v2302_v54 = vsel %vm170_vm11, %v538_v53, -1e+30 }
 0x447   :  { %540 = vmax.xlane.f32.xlu0 %v2302_v54 }
 0x48b   :  { %v949_v17 = vpop.xlane.xlu1 %948 }
 0x48c   :  { %v950_v10 = vmul.f32 0.015625, %v949_v17  ;;  %v2636_v17 = vld [vmem:[#allocation22_spill] sm:$0xff] }
 0x48e   :  { %v951_v7 = vsub.f32 %v945_v34, %v950_v10 }
 0x490   :  { %v952_v61 = vsel %vm169_vm2, %v951_v7, 0.0  ;;  %v2637_v7 = vld [vmem:[#allocation23_spill] sm:$0xff] }
 0x491   :  { %v953_v18 = vmul.f32 %v952_v61, %v952_v61 }
 0x493   :  { %v954_v40 = vsel %vm377_vm1, %v953_v18, 0.0  ;;  %v2350_v18 = vpop.f32.mrf.mxu2 }
 0x494   :  { %955 = vadd.xlane.f32.xlu2 %v954_v40 }
 0x49b   :  { %v2352_v40 = vpop.f32.mrf.mxu2 }
 0x507   :  { %v956_v26 = vpop.xlane.xlu2 %955 }
 0x508   :  { %v957_v11 = vmul.f32 0.015625, %v956_v26  ;;  %v2354_v26 = vpop.f32.mrf.mxu2 }
 0x50a   :  { %v958_v62 = vadd.f32 1e-05, %v957_v11 }
 0x50c   :  { %1445 = vrsqrt.f32 %v958_v62  ;;  %vm965_vm13 = vweird.f32 %v958_v62 }
 0x510   :  { %v2356_v11 = vpop.f32.mrf.mxu2 }
 0x512   :  { %v1446_v28 = vpop.eup %1445 }
 0x513   :  { %v960_v44 = vmul.f32 %v1446_v28, %v958_v62  ;;  %vm966_vm12 = vweird.f32 %v1446_v28 }
 0x514   :  { %vm967_vm14 = vmor %vm965_vm13, %vm966_vm12 }
 0x515   :  { %v961_v32 = vmul.f32 %v1446_v28, %v960_v44 }
 0x517   :  { %v962_v33 = vmul.f32 0.5, %v961_v32 }
 0x519   :  { %v963_v16 = vsub.f32 1.5, %v962_v33 }
 0x51b   :  { %v964_v29 = vmul.f32 %v1446_v28, %v963_v16 }
 0x51d   :  { %v968_v34 = vsel %vm967_vm14, %v1446_v28, %v964_v29 }
 0x51e   :  { %v969_v6 = vmul.f32 %v968_v34, %v952_v61 }
 0x520   :  { %v970_v13 = vmul.f32 %v969_v6, %v2628_v39 }
 0x522   :  { %v971_v43 = vadd.f32 %v970_v13, %v2629_v57 }
 0x524   :  { %v1329_v23 = vmul.f32 -1.442695, %v971_v43 }
 0x526   :  { %1447 = vpow2.f32 %v1329_v23 }
 0x52c   :  { %v1448_v20 = vpop.eup %1447 }
 0x52d   :  { %v975_v8 = vadd.f32 1.0, %v1448_v20 }
 0x52f   :  { %1449 = vrcp.f32 %v975_v8  ;;  %v987_v3 = vand.u32 2147483648, %v975_v8  ;;  %v985_v4 = vand.u32 2147483647, %v975_v8  ;;  %vm981_vm0 = vweird.f32 %v975_v8 }
 0x531   :  { %v988_v47 = vor.u32 1.1754944e-38, %v987_v3  ;;  %vm986_vm2 = vcmp.eq.f32.partialorder %v985_v4, 8.507059e+37 }
 0x535   :  { %v1450_v58 = vpop.eup %1449 }
 0x536   :  { %v977_v45 = vmul.f32 %v1450_v58, %v975_v8  ;;  %vm982_vm15 = vweird.f32 %v1450_v58 }
 0x537   :  { %vm983_vm1 = vmor %vm981_vm0, %vm982_vm15 }
 0x538   :  { %v978_v2 = vsub.f32 1.0, %v977_v45 }
 0x53a   :  { %v979_v46 = vmul.f32 %v1450_v58, %v978_v2 }
 0x53c   :  { %v980_v59 = vadd.f32 %v1450_v58, %v979_v46 }
 0x53e   :  { %v984_v14 = vsel %vm983_vm1, %v1450_v58, %v980_v59 }
 0x53f   :  { %v989_v21 = vsel %vm986_vm2, %v988_v47, %v984_v14 }
 0x540   :  { %v991_v0 = vperm.slane %v989_v21, 0 }
 0x542   :  { %v2311_v48 = vmul.f32 %v991_v0, %v2630_v24  ;;  %v2314_v55 = vmul.f32 %v991_v0, %v2631_v22  ;;  %v2320_v49 = vmul.f32 %v991_v0, %v2632_v37  ;;  %v2323_v56 = vmul.f32 %v991_v0, %v2633_v50 }
 0x543   :  { %v2328_v51 = vmul.f32 %v991_v0, %v2634_v19  ;;  %v2333_v53 = vmul.f32 %v991_v0, %v2635_v52  ;;  %v2338_v10 = vmul.f32 %v991_v0, %v2636_v17  ;;  %v2343_v61 = vmul.f32 %v991_v0, %v2637_v7  ;;  %v541_v7 = vpop.xlane.xlu0 %540 }
 0x544   :  { %1016 = vmatmul.f32.vlgmr.msrb.gmra.mxu2 %v2311_v48  ;;  %1057 = vmatmul.f32.vlgmr.msra.gmra.mxu1 %v2311_v48 }
 0x545   :  { %1063 = vmatmul.f32.vlgmr.msrb.gmra.mxu3 %v2314_v55 }
 0x54c   :  { %1019 = vmatmul.f32.gmra.mxu2 %v2320_v49 }
 0x54d   :  { %1066 = vmatmul.f32.gmra.mxu3 %v2323_v56 }
 0x554   :  { %1022 = vmatmul.f32.gmra.mxu2 %v2314_v55 }
 0x555   :  { %1069 = vmatmul.f32.gmra.mxu3 %v2328_v51 }
 0x55c   :  { %1025 = vmatmul.f32.gmra.mxu2 %v2323_v56 }
 0x55d   :  { %1072 = vmatmul.f32.gmra.mxu3 %v2333_v53 }
 0x564   :  { %1028 = vmatmul.f32.gmra.mxu2 %v2328_v51 }
 0x565   :  { %1075 = vmatmul.f32.gmra.mxu3 %v2338_v10 }
 0x56c   :  { %1031 = vmatmul.f32.gmra.mxu2 %v2333_v53 }
 0x56d   :  { %1078 = vmatmul.f32.gmra.mxu3 %v2343_v61 }
 0x574   :  { %1034 = vmatmul.f32.gmra.mxu2 %v2338_v10 }
 0x57c   :  { %1037 = vmatmul.f32.gmra.mxu2 %v2343_v61 }
 0x584   :  { %1060 = vmatmul.f32.vlgmr.msra.gmra.mxu2 %v2320_v49 }
 0x5c1   :  { %v1058_v43 = vpop.f32.mrf.mxu1 }
 0x5c2   :  { %v1059_v8 = vadd.f32 %v1058_v43, %v2286_v42 }
 0x5c7   :  { %v2358_v62 = vpop.f32.mrf.mxu2 }
 0x5c8   :  { %v1064_v32 = vpop.f32.mrf.mxu3 }
 0x5c9   :  { %v1065_v45 = vadd.f32 %v1064_v32, %v2286_v42 }
 0x5cf   :  { %v2360_v28 = vpop.f32.mrf.mxu2 }
 0x5d0   :  { %v1067_v29 = vpop.f32.mrf.mxu3 }
 0x5d1   :  { %v1068_v3 = vadd.f32 %v1067_v29, %v2286_v42  ;;  %v542_v29 = vsub.f32 %v2302_v54, %v541_v7  ;;  %v2387_v54 = vperm.slane %v2283_v30, 0 }
 0x5d3   :  { %v454_v9 = vadd.f32 %v2273_v38, %v2387_v54  ;;  %v466_v30 = vadd.f32 %v2350_v18, %v2387_v54  ;;  %v463_v38 = vadd.f32 %v2279_v36, %v2387_v54  ;;  %v1018_v36 = vadd.f32 %v2358_v62, %v2387_v54 }
 0x5d7   :  { %v2362_v44 = vpop.f32.mrf.mxu2 }
 0x5d8   :  { %v1070_v6 = vpop.f32.mrf.mxu3 }
 0x5d9   :  { %v1071_v4 = vadd.f32 %v1070_v6, %v2286_v42 }
 0x5df   :  { %v2364_v33 = vpop.f32.mrf.mxu2 }
 0x5e0   :  { %v1073_v13 = vpop.f32.mrf.mxu3 }
 0x5e1   :  { %v1074_v47 = vadd.f32 %v1073_v13, %v2286_v42 }
 0x5e7   :  { %v2366_v16 = vpop.f32.mrf.mxu2 }
 0x5e8   :  { %v1076_v23 = vpop.f32.mrf.mxu3  ;;  %v1030_v62 = vadd.f32 %v2366_v16, %v2387_v54 }
 0x5e9   :  { %v1077_v0 = vadd.f32 %v1076_v23, %v2286_v42 }
 0x5ef   :  { %v2368_v34 = vpop.f32.mrf.mxu2 }
 0x5f0   :  { %v1079_v21 = vpop.f32.mrf.mxu3 }
 0x5f1   :  { %v1080_v22 = vadd.f32 %v1079_v21, %v2286_v42 }
 0x5f7   :  { %v2370_v39 = vpop.f32.mrf.mxu2 }
 0x5ff   :  { %v2372_v57 = vpop.f32.mrf.mxu2 }
 0x607   :  { %v1061_v20 = vpop.f32.mrf.mxu2 }
 0x608   :  { %v1062_v58 = vadd.f32 %v1061_v20, %v2286_v42  ;;  %v543_v20 = vmul.f32 1.442695, %v542_v29 }
 0x60a   :  { %v1082_v2 = vadd.f32 %v1062_v58, %v1059_v8  ;;  %1451 = vpow2.f32 %v543_v20 }
 0x60c   :  { %v1083_v46 = vadd.f32 %v1082_v2, %v1065_v45 }
 0x60e   :  { %v1084_v59 = vadd.f32 %v1083_v46, %v1068_v3 }
 0x610   :  { %v1085_v14 = vadd.f32 %v1084_v59, %v1071_v4  ;;  %v1452_v42 = vpop.eup %1451  ;;  %v460_v4 = vadd.f32 %v2277_v5, %v2387_v54  ;;  %v475_v5 = vadd.f32 %v2356_v11, %v2387_v54 }
 0x612   :  { %v1086_v24 = vadd.f32 %v1085_v14, %v1074_v47 }
 0x614   :  { %v1087_v37 = vadd.f32 %v1086_v24, %v1077_v0  ;;  %v469_v0 = vadd.f32 %v2352_v40, %v2387_v54 }
 0x616   :  { %v1088_v50 = vadd.f32 %v1087_v37, %v1080_v22  ;;  %v472_v37 = vadd.f32 %v2354_v26, %v2387_v54 }
 0x618   :  { %v1089_v19 = vrot.slane %v1088_v50, 4 }
 0x61a   :  { %v1090_v52 = vadd.f32 %v1089_v19, %v1088_v50 }
 0x61c   :  { %v1091_v17 = vrot.slane %v1090_v52, 2 }
 0x61e   :  { %v1092_v32 = vadd.f32 %v1091_v17, %v1090_v52  ;;  %v1021_v52 = vadd.f32 %v2360_v28, %v2387_v54  ;;  %v1024_v17 = vadd.f32 %v2362_v44, %v2387_v54  ;;  %v1033_v28 = vadd.f32 %v2368_v34, %v2387_v54 }
 0x620   :  { %v1093_v6 = vrot.slane %v1092_v32, 1 }
 0x622   :  { %v1094_v43 = vadd.f32 %v1093_v6, %v1092_v32 }
 0x624   :  { %v1095_v13 = vmul.f32 %v1094_v43, %v2296_v1  ;;  %v457_v1 = vadd.f32 %v2275_v25, %v2387_v54 }
 0x626   :  { %v1096_v23 = vsel %vm170_vm11, %v1095_v13, -1e+30 }
 0x627   :  { %1097 = vmax.xlane.f32.xlu1 %v1096_v23 }
 0x62f   :  { %545 = vadd.xlane.f32.xlu1 %v1452_v42 }
 0x69a   :  { %v1098_v8 = vpop.xlane.xlu1 %1097 }
 0x69b   :  { %v1099_v58 = vsub.f32 %v1096_v23, %v1098_v8 }
 0x69d   :  { %v1100_v45 = vmul.f32 1.442695, %v1099_v58  ;;  %v1027_v58 = vadd.f32 %v2364_v33, %v2387_v54 }
 0x69f   :  { %1453 = vpow2.f32 %v1100_v45 }
 0x6a2   :  { %v546_v2 = vpop.xlane.xlu1 %545 }
 0x6a3   :  { %1455 = vrcp.f32 %v546_v2 }
 0x6a5   :  { %v1454_v3 = vpop.eup %1453 }
 0x6a6   :  { %1102 = vadd.xlane.f32.xlu2 %v1454_v3 }
 0x6a9   :  { %v1456_v46 = vpop.eup %1455 }
 0x6aa   :  { %v548_v59 = vmul.f32 %v1456_v46, %v1452_v42 }
 0x6ac   :  { %v551_v47 = vmul.f32 %v548_v59, %v460_v4  ;;  %v550_v14 = vmul.f32 %v548_v59, %v457_v1  ;;  %v549_v21 = vmul.f32 %v548_v59, %v454_v9  ;;  %v554_v25 = vmul.f32 %v548_v59, %v469_v0 }
 0x6ad   :  { %v553_v24 = vmul.f32 %v548_v59, %v466_v30  ;;  %v552_v22 = vmul.f32 %v548_v59, %v463_v38  ;;  %v556_v50 = vmul.f32 %v548_v59, %v475_v5  ;;  %v555_v18 = vmul.f32 %v548_v59, %v472_v37 }
 0x6ae   :  { %561 = vadd.xlane.f32.xlu2 %v551_v47  ;;  %559 = vadd.xlane.f32.xlu1 %v550_v14  ;;  %v1036_v14 = vadd.f32 %v2370_v39, %v2387_v54 }
 0x6af   :  { %557 = vadd.xlane.f32.xlu0 %v549_v21  ;;  %v1039_v21 = vadd.f32 %v2372_v57, %v2387_v54 }
 0x6b6   :  { %567 = vadd.xlane.f32.xlu2 %v554_v25  ;;  %565 = vadd.xlane.f32.xlu1 %v553_v24 }
 0x6b7   :  { %563 = vadd.xlane.f32.xlu0 %v552_v22 }
 0x6be   :  { %571 = vadd.xlane.f32.xlu1 %v556_v50 }
 0x6bf   :  { %569 = vadd.xlane.f32.xlu0 %v555_v18 }
 0x719   :  { %v1103_v40 = vpop.xlane.xlu2 %1102 }
 0x71a   :  { %1457 = vrcp.f32 %v1103_v40 }
 0x720   :  { %v1458_v19 = vpop.eup %1457 }
 0x721   :  { %v1105_v11 = vmul.f32 %v1458_v19, %v1454_v3  ;;  %v562_v7 = vpop.xlane.xlu2 %561  ;;  %v560_v32 = vpop.xlane.xlu1 %559 }
 0x722   :  { %v1323_v26 = vmul.f32 -1.442695, %v562_v7  ;;  %v1322_v29 = vmul.f32 -1.442695, %v560_v32  ;;  %v558_v6 = vpop.xlane.xlu0 %557 }
 0x723   :  { %v1321_v43 = vmul.f32 -1.442695, %v558_v6  ;;  %v1108_v20 = vmul.f32 %v1105_v11, %v1024_v17  ;;  %v1107_v13 = vmul.f32 %v1105_v11, %v1021_v52  ;;  %v1106_v23 = vmul.f32 %v1105_v11, %v1018_v36 }
 0x724   :  { %1459 = vpow2.f32 %v1323_v26  ;;  %v1111_v1 = vmul.f32 %v1105_v11, %v1033_v28  ;;  %v1110_v4 = vmul.f32 %v1105_v11, %v1030_v62  ;;  %v1109_v34 = vmul.f32 %v1105_v11, %v1027_v58 }
 0x725   :  { %1461 = vpow2.f32 %v1322_v29  ;;  %1118 = vadd.xlane.f32.xlu1 %v1108_v20  ;;  %1116 = vadd.xlane.f32.xlu0 %v1107_v13  ;;  %v1113_v50 = vmul.f32 %v1105_v11, %v1039_v21  ;;  %v1112_v18 = vmul.f32 %v1105_v11, %v1036_v14 }
 0x726   :  { %1463 = vpow2.f32 %v1321_v43  ;;  %1114 = vadd.xlane.f32.xlu2 %v1106_v23 }
 0x729   :  { %v568_v44 = vpop.xlane.xlu2 %567  ;;  %v566_v42 = vpop.xlane.xlu1 %565 }
 0x72a   :  { %v1460_v8 = vpop.eup %1459  ;;  %v1326_v45 = vmul.f32 -1.442695, %v568_v44  ;;  %v564_v2 = vpop.xlane.xlu0 %563  ;;  %v1325_v9 = vmul.f32 -1.442695, %v566_v42 }
 0x72b   :  { %v1462_v3 = vpop.eup %1461  ;;  %v2417_v46 = vadd.f32 1.0, %v1460_v8  ;;  %v1324_v16 = vmul.f32 -1.442695, %v564_v2 }
 0x72c   :  { %v1464_v59 = vpop.eup %1463  ;;  %v2419_v47 = vadd.f32 1.0, %v1462_v3  ;;  %1465 = vpow2.f32 %v1326_v45 }
 0x72d   :  { %1467 = vrcp.f32 %v2417_v46  ;;  %1124 = vadd.xlane.f32.xlu1 %v1111_v1  ;;  %1122 = vadd.xlane.f32.xlu0 %v1110_v4  ;;  %v2423_v33 = vadd.f32 1.0, %v1464_v59  ;;  %v644_v30 = vand.u32 2147483647, %v2417_v46  ;;  %v646_v22 = vand.u32 2147483648, %v2417_v46 }
 0x72e   :  { %1469 = vrcp.f32 %v2419_v47  ;;  %1120 = vadd.xlane.f32.xlu2 %v1109_v34  ;;  %vm640_vm3 = vweird.f32 %v2417_v46  ;;  %vm625_vm4 = vweird.f32 %v2419_v47  ;;  %v629_v57 = vand.u32 2147483647, %v2419_v47 }
 0x72f   :  { %1471 = vpow2.f32 %v1325_v9  ;;  %vm2438_vm5 = vcmp.eq.f32.partialorder %v644_v30, 8.507059e+37  ;;  %v631_v52 = vand.u32 2147483648, %v2419_v47  ;;  %v647_v29 = vor.u32 1.1754944e-38, %v646_v22 }
 0x730   :  { %1473 = vpow2.f32 %v1324_v16  ;;  %v614_v43 = vand.u32 2147483647, %v2423_v33  ;;  %vm2450_vm7 = vcmp.eq.f32.partialorder %v629_v57, 8.507059e+37  ;;  %vm610_vm9 = vweird.f32 %v2423_v33 }
 0x731   :  { %1475 = vrcp.f32 %v2423_v33  ;;  %v572_v0 = vpop.xlane.xlu1 %571  ;;  %v632_v44 = vor.u32 1.1754944e-38, %v631_v52  ;;  %v616_v3 = vand.u32 2147483648, %v2423_v33 }
 0x732   :  { %v1466_v38 = vpop.eup %1465  ;;  %v1328_v25 = vmul.f32 -1.442695, %v572_v0  ;;  %v570_v37 = vpop.xlane.xlu0 %569  ;;  %vm2459_vm11 = vcmp.eq.f32.partialorder %v614_v43, 8.507059e+37 }
 0x733   :  { %v1468_v24 = vpop.eup %1467  ;;  %v2432_v5 = vadd.f32 1.0, %v1466_v38  ;;  %v1327_v32 = vmul.f32 -1.442695, %v570_v37 }
 0x734   :  { %v1470_v40 = vpop.eup %1469  ;;  %v636_v39 = vmul.f32 %v1468_v24, %v2417_v46  ;;  %vm641_vm6 = vweird.f32 %v1468_v24 }
 0x735   :  { %v1472_v54 = vpop.eup %1471  ;;  %v621_v36 = vmul.f32 %v1470_v40, %v2419_v47  ;;  %1477 = vrcp.f32 %v2432_v5  ;;  %1128 = vadd.xlane.f32.xlu0 %v1113_v50  ;;  %vm626_vm8 = vweird.f32 %v1470_v40  ;;  %vm642_vm10 = vmor %vm640_vm3, %vm641_vm6  ;;  %v689_v34 = vand.u32 2147483647, %v2432_v5 }
 0x736   :  { %v1474_v17 = vpop.eup %1473  ;;  %v637_v11 = vsub.f32 1.0, %v636_v39  ;;  %v2445_v7 = vadd.f32 1.0, %v1472_v54  ;;  %1479 = vpow2.f32 %v1328_v25  ;;  %1126 = vadd.xlane.f32.xlu2 %v1112_v18  ;;  %vm627_vm12 = vmor %vm625_vm4, %vm626_vm8  ;;  %v691_v14 = vand.u32 2147483648, %v2432_v5 }
 0x737   :  { %v1476_v26 = vpop.eup %1475  ;;  %v622_v6 = vsub.f32 1.0, %v621_v36  ;;  %v2448_v20 = vadd.f32 1.0, %v1474_v17  ;;  %vm685_vm15 = vweird.f32 %v2432_v5  ;;  %vm2485_vm1 = vcmp.eq.f32.partialorder %v689_v34, 8.507059e+37 }
 0x738   :  { %v638_v13 = vmul.f32 %v1468_v24, %v637_v11  ;;  %v606_v62 = vmul.f32 %v1476_v26, %v2423_v33  ;;  %1481 = vrcp.f32 %v2445_v7  ;;  %vm611_vm13 = vweird.f32 %v1476_v26 }
 0x739   :  { %v623_v28 = vmul.f32 %v1470_v40, %v622_v6  ;;  %1483 = vpow2.f32 %v1327_v32  ;;  %vm612_vm14 = vmor %vm610_vm9, %vm611_vm13  ;;  %v692_v39 = vor.u32 1.1754944e-38, %v691_v14  ;;  %vm670_vm3 = vweird.f32 %v2445_v7 }
 0x73a   :  { %v639_v42 = vadd.f32 %v1468_v24, %v638_v13  ;;  %v607_v8 = vsub.f32 1.0, %v606_v62  ;;  %1485 = vrcp.f32 %v2448_v20  ;;  %v674_v52 = vand.u32 2147483647, %v2445_v7 }
 0x73b   :  { %v1478_v58 = vpop.eup %1477  ;;  %v624_v45 = vadd.f32 %v1470_v40, %v623_v28  ;;  %v676_v17 = vand.u32 2147483648, %v2445_v7  ;;  %v659_v6 = vand.u32 2147483647, %v2448_v20 }
 0x73c   :  { %v1480_v9 = vpop.eup %1479  ;;  %v643_v1 = vsel %vm642_vm10, %v1468_v24, %v639_v42  ;;  %v608_v4 = vmul.f32 %v1476_v26, %v607_v8  ;;  %v681_v46 = vmul.f32 %v1478_v58, %v2432_v5  ;;  %v617_v24 = vor.u32 1.1754944e-38, %v616_v3 }
 0x73d   :  { %v648_v59 = vsel %vm2438_vm5, %v647_v29, %v643_v1  ;;  %v628_v16 = vsel %vm627_vm12, %v1470_v40, %v624_v45  ;;  %v2480_v22 = vadd.f32 1.0, %v1480_v9  ;;  %vm686_vm0 = vweird.f32 %v1478_v58 }
 0x73e   :  { %v727_v21 = vmul.f32 %v648_v59, %v2241_v15  ;;  %v633_v30 = vsel %vm2450_vm7, %v632_v44, %v628_v16  ;;  %v609_v0 = vadd.f32 %v1476_v26, %v608_v4  ;;  %v682_v47 = vsub.f32 1.0, %v681_v46  ;;  %v1482_v38 = vpop.eup %1481  ;;  %vm687_vm2 = vmor %vm685_vm15, %vm686_vm0 }
 0x73f   :  { %v726_v25 = vmul.f32 %v633_v30, %v2227_v27  ;;  %v1484_v37 = vpop.eup %1483  ;;  %v666_v18 = vmul.f32 %v1482_v38, %v2445_v7  ;;  %1487 = vrcp.f32 %v2480_v22  ;;  %vm671_vm4 = vweird.f32 %v1482_v38 }
 0x740   :  { %735 = vst [vmem:[#allocation11 + $0x10] sm:$0xff] %v727_v21  ;;  %v613_v50 = vsel %vm612_vm14, %v1476_v26, %v609_v0  ;;  %v683_v15 = vmul.f32 %v1478_v58, %v682_v47  ;;  %v1486_v40 = vpop.eup %1485  ;;  %v603_v11 = vadd.f32 1.0, %v1484_v37  ;;  %v661_v5 = vand.u32 2147483648, %v2448_v20  ;;  %vm672_vm6 = vmor %vm670_vm3, %vm671_vm4 }
 0x741   :  { %734 = vst [vmem:[#allocation11 + $0x8] sm:$0xff] %v726_v25  ;;  %v618_v27 = vsel %vm2459_vm11, %v617_v24, %v613_v50  ;;  %v667_v19 = vsub.f32 1.0, %v666_v18  ;;  %v651_v36 = vmul.f32 %v1486_v40, %v2448_v20  ;;  %vm656_vm5 = vweird.f32 %v1486_v40 }
 0x742   :  { %v725_v57 = vmul.f32 %v618_v27, %v2210_v12  ;;  %v684_v54 = vadd.f32 %v1478_v58, %v683_v15  ;;  %1489 = vrcp.f32 %v603_v11  ;;  %v677_v28 = vor.u32 1.1754944e-38, %v676_v17 }
 0x743   :  { %v668_v26 = vmul.f32 %v1482_v38, %v667_v19  ;;  %v652_v29 = vsub.f32 1.0, %v651_v36  ;;  %vm655_vm7 = vweird.f32 %v2448_v20  ;;  %vm675_vm8 = vcmp.eq.f32.partialorder %v674_v52, 8.507059e+37 }
 0x744   :  { %733 = vst [vmem:[#allocation11] sm:$0xff] %v725_v57  ;;  %v688_v32 = vsel %vm687_vm2, %v1478_v58, %v684_v54  ;;  %vm657_vm9 = vmor %vm655_vm7, %vm656_vm5  ;;  %v662_v45 = vor.u32 1.1754944e-38, %v661_v5  ;;  %vm660_vm10 = vcmp.eq.f32.partialorder %v659_v6, 8.507059e+37  ;;  %v719_v1 = vand.u32 2147483647, %v2480_v22 }
 0x745   :  { %v693_v12 = vsel %vm2485_vm1, %v692_v39, %v688_v32  ;;  %v669_v13 = vadd.f32 %v1482_v38, %v668_v26  ;;  %v653_v23 = vmul.f32 %v1486_v40, %v652_v29  ;;  %v1488_v62 = vpop.eup %1487  ;;  %v721_v20 = vand.u32 2147483648, %v2480_v22 }
 0x746   :  { %v730_v43 = vmul.f32 %v693_v12, %v2229_v31  ;;  %v711_v8 = vmul.f32 %v1488_v62, %v2480_v22  ;;  %vm716_vm11 = vweird.f32 %v1488_v62  ;;  %vm715_vm12 = vweird.f32 %v2480_v22 }
 0x747   :  { %v673_v44 = vsel %vm672_vm6, %v1482_v38, %v669_v13  ;;  %v654_v42 = vadd.f32 %v1486_v40, %v653_v23  ;;  %vm717_vm13 = vmor %vm715_vm12, %vm716_vm11  ;;  %vm720_vm14 = vcmp.eq.f32.partialorder %v719_v1, 8.507059e+37  ;;  %v722_v34 = vor.u32 1.1754944e-38, %v721_v20 }
 0x748   :  { %738 = vst [vmem:[#allocation11 + $0x28] sm:$0xff] %v730_v43  ;;  %v678_v58 = vsel %vm675_vm8, %v677_v28, %v673_v44  ;;  %v712_v3 = vsub.f32 1.0, %v711_v8  ;;  %v1490_v9 = vpop.eup %1489  ;;  %v706_v14 = vand.u32 2147483648, %v603_v11  ;;  %v704_v0 = vand.u32 2147483647, %v603_v11 }
 0x749   :  { %v729_v31 = vmul.f32 %v678_v58, %v2212_v63  ;;  %v658_v2 = vsel %vm657_vm9, %v1486_v40, %v654_v42  ;;  %v696_v59 = vmul.f32 %v1490_v9, %v603_v11  ;;  %vm701_vm15 = vweird.f32 %v1490_v9 }
 0x74a   :  { %v663_v7 = vsel %vm660_vm10, %v662_v45, %v658_v2  ;;  %v713_v46 = vmul.f32 %v1488_v62, %v712_v3  ;;  %vm700_vm0 = vweird.f32 %v603_v11  ;;  %v707_v25 = vor.u32 1.1754944e-38, %v706_v14 }
 0x74b   :  { %737 = vst [vmem:[#allocation11 + $0x20] sm:$0xff] %v729_v31  ;;  %v728_v4 = vmul.f32 %v663_v7, %v2252_v35  ;;  %v697_v63 = vsub.f32 1.0, %v696_v59  ;;  %vm702_vm1 = vmor %vm700_vm0, %vm701_vm15  ;;  %vm705_vm2 = vcmp.eq.f32.partialorder %v704_v0, 8.507059e+37 }
 0x74c   :  { %v714_v16 = vadd.f32 %v1488_v62, %v713_v46 }
 0x74d   :  { %736 = vst [vmem:[#allocation11 + $0x18] sm:$0xff] %v728_v4  ;;  %v698_v30 = vmul.f32 %v1490_v9, %v697_v63 }
 0x74e   :  { %v718_v21 = vsel %vm717_vm13, %v1488_v62, %v714_v16 }
 0x74f   :  { %v723_v47 = vsel %vm720_vm14, %v722_v34, %v718_v21  ;;  %v699_v35 = vadd.f32 %v1490_v9, %v698_v30 }
 0x750   :  { %v732_v38 = vmul.f32 %v723_v47, %v2254_v41 }
 0x751   :  { %v703_v24 = vsel %vm702_vm1, %v1490_v9, %v699_v35 }
 0x752   :  { %740 = vst [vmem:[#allocation11 + $0x38] sm:$0xff] %v732_v38  ;;  %v708_v22 = vsel %vm705_vm2, %v707_v25, %v703_v24 }
 0x753   :  { %v731_v37 = vmul.f32 %v708_v22, %v2243_v60 }
 0x755   :  { %739 = vst [vmem:[#allocation11 + $0x30] sm:$0xff] %v731_v37 }
 0x798   :  { %v1119_v50 = vpop.xlane.xlu1 %1118  ;;  %v1117_v15 = vpop.xlane.xlu0 %1116 }
 0x799   :  { %v1332_v18 = vmul.f32 -1.442695, %v1119_v50  ;;  %v1331_v40 = vmul.f32 -1.442695, %v1117_v15  ;;  %v1115_v27 = vpop.xlane.xlu2 %1114 }
 0x79a   :  { %v1330_v33 = vmul.f32 -1.442695, %v1115_v27 }
 0x79b   :  { %1491 = vpow2.f32 %v1332_v18 }
 0x79c   :  { %1493 = vpow2.f32 %v1331_v40 }
 0x79d   :  { %1495 = vpow2.f32 %v1330_v33 }
 0x7a0   :  { %v1125_v41 = vpop.xlane.xlu1 %1124  ;;  %v1123_v39 = vpop.xlane.xlu0 %1122 }
 0x7a1   :  { %v1492_v57 = vpop.eup %1491  ;;  %v1335_v54 = vmul.f32 -1.442695, %v1125_v41  ;;  %v1121_v19 = vpop.xlane.xlu2 %1120  ;;  %v1334_v17 = vmul.f32 -1.442695, %v1123_v39 }
 0x7a2   :  { %v1494_v36 = vpop.eup %1493  ;;  %v1156_v52 = vadd.f32 1.0, %v1492_v57  ;;  %v1333_v32 = vmul.f32 -1.442695, %v1121_v19 }
 0x7a3   :  { %v1496_v11 = vpop.eup %1495  ;;  %v1155_v60 = vadd.f32 1.0, %v1494_v36  ;;  %1497 = vpow2.f32 %v1335_v54 }
 0x7a4   :  { %1499 = vrcp.f32 %v1156_v52  ;;  %v2513_v26 = vadd.f32 1.0, %v1496_v11  ;;  %v1201_v29 = vand.u32 2147483647, %v1156_v52  ;;  %v1203_v13 = vand.u32 2147483648, %v1156_v52 }
 0x7a5   :  { %1501 = vrcp.f32 %v1155_v60  ;;  %vm1197_vm3 = vweird.f32 %v1156_v52  ;;  %vm1182_vm4 = vweird.f32 %v1155_v60  ;;  %v1186_v42 = vand.u32 2147483647, %v1155_v60 }
 0x7a6   :  { %1503 = vpow2.f32 %v1334_v17  ;;  %vm2518_vm5 = vcmp.eq.f32.partialorder %v1201_v29, 8.507059e+37  ;;  %v1188_v31 = vand.u32 2147483648, %v1155_v60  ;;  %v1204_v20 = vor.u32 1.1754944e-38, %v1203_v13 }
 0x7a7   :  { %1505 = vpow2.f32 %v1333_v32  ;;  %v1171_v46 = vand.u32 2147483647, %v2513_v26  ;;  %vm2528_vm7 = vcmp.eq.f32.partialorder %v1186_v42, 8.507059e+37  ;;  %vm1167_vm9 = vweird.f32 %v2513_v26 }
 0x7a8   :  { %1507 = vrcp.f32 %v2513_v26  ;;  %v1129_v12 = vpop.xlane.xlu0 %1128  ;;  %v1189_v21 = vor.u32 1.1754944e-38, %v1188_v31  ;;  %v1173_v25 = vand.u32 2147483648, %v2513_v26 }
 0x7a9   :  { %v1498_v6 = vpop.eup %1497  ;;  %v1337_v5 = vmul.f32 -1.442695, %v1129_v12  ;;  %v1127_v62 = vpop.xlane.xlu2 %1126  ;;  %vm2536_vm11 = vcmp.eq.f32.partialorder %v1171_v46, 8.507059e+37 }
 0x7aa   :  { %v1500_v43 = vpop.eup %1499  ;;  %v2516_v23 = vadd.f32 1.0, %v1498_v6  ;;  %v1336_v7 = vmul.f32 -1.442695, %v1127_v62  ;;  %v1174_v36 = vor.u32 1.1754944e-38, %v1173_v25 }
 0x7ab   :  { %v1502_v28 = vpop.eup %1501  ;;  %v1193_v44 = vmul.f32 %v1500_v43, %v1156_v52  ;;  %vm1198_vm6 = vweird.f32 %v1500_v43 }
 0x7ac   :  { %v1504_v8 = vpop.eup %1503  ;;  %v1178_v45 = vmul.f32 %v1502_v28, %v1155_v60  ;;  %1509 = vrcp.f32 %v2516_v23  ;;  %vm1183_vm8 = vweird.f32 %v1502_v28  ;;  %vm1199_vm10 = vmor %vm1197_vm3, %vm1198_vm6  ;;  %v1246_v40 = vand.u32 2147483647, %v2516_v23 }
 0x7ad   :  { %v1506_v2 = vpop.eup %1505  ;;  %v1194_v3 = vsub.f32 1.0, %v1193_v44  ;;  %v2523_v9 = vadd.f32 1.0, %v1504_v8  ;;  %1511 = vpow2.f32 %v1337_v5  ;;  %vm1184_vm12 = vmor %vm1182_vm4, %vm1183_vm8  ;;  %v1248_v27 = vand.u32 2147483648, %v2516_v23 }
 0x7ae   :  { %v1508_v1 = vpop.eup %1507  ;;  %v1179_v4 = vsub.f32 1.0, %v1178_v45  ;;  %v2526_v59 = vadd.f32 1.0, %v1506_v2  ;;  %vm1242_vm15 = vweird.f32 %v2516_v23  ;;  %vm2561_vm1 = vcmp.eq.f32.partialorder %v1246_v40, 8.507059e+37 }
 0x7af   :  { %v1195_v16 = vmul.f32 %v1500_v43, %v1194_v3  ;;  %v1163_v34 = vmul.f32 %v1508_v1, %v2513_v26  ;;  %1513 = vrcp.f32 %v2523_v9  ;;  %vm1168_vm13 = vweird.f32 %v1508_v1 }
 0x7b0   :  { %v1180_v14 = vmul.f32 %v1502_v28, %v1179_v4  ;;  %1515 = vpow2.f32 %v1336_v7  ;;  %vm1169_vm14 = vmor %vm1167_vm9, %vm1168_vm13  ;;  %v1249_v29 = vor.u32 1.1754944e-38, %v1248_v27  ;;  %vm1227_vm3 = vweird.f32 %v2523_v9 }
 0x7b1   :  { %v1196_v30 = vadd.f32 %v1500_v43, %v1195_v16  ;;  %v1164_v0 = vsub.f32 1.0, %v1163_v34  ;;  %1517 = vrcp.f32 %v2526_v59  ;;  %v1231_v13 = vand.u32 2147483647, %v2523_v9 }
 0x7b2   :  { %v1510_v47 = vpop.eup %1509  ;;  %v1181_v38 = vadd.f32 %v1502_v28, %v1180_v14  ;;  %v1233_v62 = vand.u32 2147483648, %v2523_v9  ;;  %v1216_v58 = vand.u32 2147483647, %v2526_v59 }
 0x7b3   :  { %v1512_v24 = vpop.eup %1511  ;;  %v1200_v22 = vsel %vm1199_vm10, %v1500_v43, %v1196_v30  ;;  %v1165_v37 = vmul.f32 %v1508_v1, %v1164_v0  ;;  %v1238_v50 = vmul.f32 %v1510_v47, %v2516_v23  ;;  %vm1243_vm0 = vweird.f32 %v1510_v47 }
 0x7b4   :  { %v1205_v15 = vsel %vm2518_vm5, %v1204_v20, %v1200_v22  ;;  %v1185_v18 = vsel %vm1184_vm12, %v1502_v28, %v1181_v38  ;;  %v2556_v52 = vadd.f32 1.0, %v1512_v24  ;;  %vm1244_vm2 = vmor %vm1242_vm15, %vm1243_vm0  ;;  %v1218_v23 = vand.u32 2147483648, %v2526_v59 }
 0x7b5   :  { %v1284_v33 = vmul.f32 %v1205_v15, %v2314_v55  ;;  %v1190_v41 = vsel %vm2528_vm7, %v1189_v21, %v1185_v18  ;;  %v1166_v39 = vadd.f32 %v1508_v1, %v1165_v37  ;;  %v1239_v57 = vsub.f32 1.0, %v1238_v50  ;;  %v1514_v54 = vpop.eup %1513 }
 0x7b6   :  { %v1283_v19 = vmul.f32 %v1190_v41, %v2320_v49  ;;  %v1516_v17 = vpop.eup %1515  ;;  %v1223_v60 = vmul.f32 %v1514_v54, %v2523_v9  ;;  %1519 = vrcp.f32 %v2556_v52  ;;  %vm1228_vm4 = vweird.f32 %v1514_v54 }
 0x7b7   :  { %1293 = vst [vmem:[#allocation11 + $0x50] sm:$0xff] %v1284_v33  ;;  %v1170_v11 = vsel %vm1169_vm14, %v1508_v1, %v1166_v39  ;;  %v1240_v55 = vmul.f32 %v1510_v47, %v1239_v57  ;;  %v1518_v32 = vpop.eup %1517  ;;  %v2573_v28 = vadd.f32 1.0, %v1516_v17  ;;  %vm1229_vm6 = vmor %vm1227_vm3, %vm1228_vm4  ;;  %v1234_v7 = vor.u32 1.1754944e-38, %v1233_v62 }
 0x7b8   :  { %1292 = vst [vmem:[#allocation11 + $0x48] sm:$0xff] %v1283_v19  ;;  %v1175_v49 = vsel %vm2536_vm11, %v1174_v36, %v1170_v11  ;;  %v1224_v5 = vsub.f32 1.0, %v1223_v60  ;;  %v1208_v43 = vmul.f32 %v1518_v32, %v2526_v59  ;;  %vm1213_vm5 = vweird.f32 %v1518_v32 }
 0x7b9   :  { %v1282_v12 = vmul.f32 %v1175_v49, %v2311_v48  ;;  %v1241_v6 = vadd.f32 %v1510_v47, %v1240_v55  ;;  %1521 = vrcp.f32 %v2573_v28  ;;  %vm1212_vm7 = vweird.f32 %v2526_v59 }
 0x7ba   :  { %v1225_v42 = vmul.f32 %v1514_v54, %v1224_v5  ;;  %v1209_v48 = vsub.f32 1.0, %v1208_v43  ;;  %vm1232_vm8 = vcmp.eq.f32.partialorder %v1231_v13, 8.507059e+37  ;;  %vm1214_vm9 = vmor %vm1212_vm7, %vm1213_vm5  ;;  %v1219_v16 = vor.u32 1.1754944e-38, %v1218_v23 }
 0x7bb   :  { %1291 = vst [vmem:[#allocation11 + $0x40] sm:$0xff] %v1282_v12  ;;  %v1245_v44 = vsel %vm1244_vm2, %v1510_v47, %v1241_v6  ;;  %vm1217_vm10 = vcmp.eq.f32.partialorder %v1216_v58, 8.507059e+37  ;;  %v1276_v21 = vand.u32 2147483647, %v2556_v52  ;;  %v1278_v59 = vand.u32 2147483648, %v2556_v52 }
 0x7bc   :  { %v1250_v8 = vsel %vm2561_vm1, %v1249_v29, %v1245_v44  ;;  %v1226_v31 = vadd.f32 %v1514_v54, %v1225_v42  ;;  %v1210_v2 = vmul.f32 %v1518_v32, %v1209_v48  ;;  %v1520_v3 = vpop.eup %1519  ;;  %vm1272_vm12 = vweird.f32 %v2556_v52 }
 0x7bd   :  { %v1287_v45 = vmul.f32 %v1250_v8, %v2333_v53  ;;  %v1268_v4 = vmul.f32 %v1520_v3, %v2556_v52  ;;  %vm1273_vm11 = vweird.f32 %v1520_v3  ;;  %vm1277_vm14 = vcmp.eq.f32.partialorder %v1276_v21, 8.507059e+37 }
 0x7be   :  { %v1230_v1 = vsel %vm1229_vm6, %v1514_v54, %v1226_v31  ;;  %v1211_v20 = vadd.f32 %v1518_v32, %v1210_v2  ;;  %vm1274_vm13 = vmor %vm1272_vm12, %vm1273_vm11  ;;  %v1279_v35 = vor.u32 1.1754944e-38, %v1278_v59  ;;  %v1263_v25 = vand.u32 2147483648, %v2573_v28 }
 0x7bf   :  { %1296 = vst [vmem:[#allocation11 + $0x68] sm:$0xff] %v1287_v45  ;;  %v1235_v46 = vsel %vm1232_vm8, %v1234_v7, %v1230_v1  ;;  %v1269_v34 = vsub.f32 1.0, %v1268_v4  ;;  %v1522_v14 = vpop.eup %1521  ;;  %v1261_v37 = vand.u32 2147483647, %v2573_v28  ;;  %vm1257_vm0 = vweird.f32 %v2573_v28 }
 0x7c0   :  { %v1286_v53 = vmul.f32 %v1235_v46, %v2328_v51  ;;  %v1215_v63 = vsel %vm1214_vm9, %v1518_v32, %v1211_v20  ;;  %v1253_v47 = vmul.f32 %v1522_v14, %v2573_v28  ;;  %vm1258_vm15 = vweird.f32 %v1522_v14 }
 0x7c1   :  { %v1220_v9 = vsel %vm1217_vm10, %v1219_v16, %v1215_v63  ;;  %v1270_v0 = vmul.f32 %v1520_v3, %v1269_v34  ;;  %vm1259_vm1 = vmor %vm1257_vm0, %vm1258_vm15  ;;  %v1264_v18 = vor.u32 1.1754944e-38, %v1263_v25  ;;  %vm1262_vm2 = vcmp.eq.f32.partialorder %v1261_v37, 8.507059e+37 }
 0x7c2   :  { %1295 = vst [vmem:[#allocation11 + $0x60] sm:$0xff] %v1286_v53  ;;  %v1285_v30 = vmul.f32 %v1220_v9, %v2323_v56  ;;  %v1254_v51 = vsub.f32 1.0, %v1253_v47 }
 0x7c3   :  { %v1271_v38 = vadd.f32 %v1520_v3, %v1270_v0 }
 0x7c4   :  { %1294 = vst [vmem:[#allocation11 + $0x58] sm:$0xff] %v1285_v30  ;;  %v1255_v22 = vmul.f32 %v1522_v14, %v1254_v51 }
 0x7c5   :  { %v1275_v24 = vsel %vm1274_vm13, %v1520_v3, %v1271_v38 }
 0x7c6   :  { %v1280_v56 = vsel %vm1277_vm14, %v1279_v35, %v1275_v24  ;;  %v1256_v15 = vadd.f32 %v1522_v14, %v1255_v22 }
 0x7c7   :  { %v1289_v50 = vmul.f32 %v1280_v56, %v2343_v61 }
 0x7c8   :  { %v1260_v40 = vsel %vm1259_vm1, %v1522_v14, %v1256_v15 }
 0x7c9   :  { %1298 = vst [vmem:[#allocation11 + $0x78] sm:$0xff] %v1289_v50  ;;  %v1265_v27 = vsel %vm1262_vm2, %v1264_v18, %v1260_v40 }
 0x7ca   :  { %v1288_v33 = vmul.f32 %v1265_v27, %v2338_v10 }
 0x7cc   :  { %1297 = vst [vmem:[#allocation11 + $0x70] sm:$0xff] %v1288_v33 }
 0x7cd   :  { %1311 = dma.vmem_to_hbm [thread:$0]  %s1304_s4, 2048, %s1306_s21, [#allocation4], %s1684_s26, %s1684_s26, %s1685_s27  }
 0x7ce   :  { %1681 = dma.done.wait [#allocation4], 2048  }
 0x7cf   :  { %1682 = vsyncadd [#allocation4], 4294965248 }
 0x7d0   :  { %1316 = vsyncpa [#allocation3], 1 }
 0x7d1   :  { %1317 = vsyncpa [#allocation6], 1 }
 0x7d2   :  { %1318 = vsyncpa [#allocation9], 1 }
 0x7d3   :  { %1319 = vsyncpa [#allocation4], 1 }

</bundles_post_ra>
